<compile_context>
chip_gen: v6e
topology: v6e:2x2x1
jax: 0.10.0
libtpu: 0.0.40
codegen_flags: <defaults>
</compile_context>

<pallas_src>
import math
import jax
import jax.numpy as jnp
from jax.experimental import pallas as pl
from jax.experimental.pallas import tpu as pltpu

# ---- static model config (small, consistent with the module) ----
BATCH = 2
SEQ = 8
D_MODEL = 32
NUM_HEADS = 4
HEAD_DIM = D_MODEL // NUM_HEADS
D_FF = 64
NUM_LAYERS = 2
EPS = 1e-6


def _layernorm_ref(x, gamma, beta, eps):
    # torch: x.std(-1) uses Bessel's correction; formula adds eps to std (not var).
    d = x.shape[-1]
    mean = jnp.mean(x, axis=-1, keepdims=True)
    var = jnp.sum((x - mean) ** 2, axis=-1, keepdims=True) / (d - 1)
    std = jnp.sqrt(var)
    return gamma * (x - mean) / (std + eps) + beta


def _layernorm_k(x, gamma, beta, eps):
    # Same math as _layernorm_ref, divide expressed as a reciprocal.
    # approx=False keeps the 1e-4 tolerance safe (approx=True would move it to the EUP
    # but needs a relaxed tolerance).
    d = x.shape[-1]
    mean = jnp.mean(x, axis=-1, keepdims=True)
    var = jnp.sum((x - mean) ** 2, axis=-1, keepdims=True) * (1.0 / (d - 1))
    std = jnp.sqrt(var)
    return gamma * (x - mean) * pl.reciprocal(std + eps, approx=False) + beta


def _qkv_perm():
    """Column permutation taking PyTorch's per-head-interleaved qkv layout
    [q_h0|k_h0|v_h0 | q_h1|k_h1|v_h1 | ...] to the kernel layout [Q_all | K_all | V_all]."""
    idx = []
    for part in range(3):              # 0 = q, 1 = k, 2 = v
        for h in range(NUM_HEADS):
            base = h * 3 * HEAD_DIM + part * HEAD_DIM
            idx.extend(range(base, base + HEAD_DIM))
    return jnp.asarray(idx, dtype=jnp.int32)


def encoder_forward(x, layer_params, final_gamma, final_beta):
    """Full Encoder forward as a single fused Pallas kernel."""
    B, S, D = x.shape
    L = len(layer_params)
    H, Dh = NUM_HEADS, HEAD_DIM
    scale = 1.0 / math.sqrt(Dh)

    # Wrapper-side (free) weight plumbing: reorder qkv columns, stack layers on leading axis.
    perm = _qkv_perm()
    reordered = [(wqkv[:, perm], bqkv[:, perm], wproj, bproj, g1, be1,
                  w1, b1, w2, b2, g2, be2)
                 for (wqkv, bqkv, wproj, bproj, g1, be1,
                      w1, b1, w2, b2, g2, be2) in layer_params]
    stacked = [jnp.stack([layer[i] for layer in reordered]) for i in range(12)]

    def kernel(x_ref, wqkv_ref, bqkv_ref, wproj_ref, bproj_ref,
               g1_ref, be1_ref, w1_ref, b1_ref, w2_ref, b2_ref,
               g2_ref, be2_ref, gf_ref, bf_ref, o_ref):
        xv = x_ref[...]                                    # (B*S, D)
        for l in range(L):                                 # static unroll over layers
            # ---- fused QKV projection: one MXU matmul for the whole (B*S, D) slab ----
            qkv = jnp.dot(xv, wqkv_ref[l],
                          preferred_element_type=jnp.float32) + bqkv_ref[l]
            # contiguous 32-lane Q/K/V slices (weights reordered wrapper-side)
            q = qkv[:, :D].reshape(B, S, D)
            k = qkv[:, D:2 * D].reshape(B, S, D)
            v = qkv[:, 2 * D:].reshape(B, S, D)

            # ---- multi-head attention: per-head einsums batched over the batch dim ----
            head_outs = []
            for h in range(H):                             # static unroll over heads
                sl = slice(h * Dh, (h + 1) * Dh)
                s = jnp.einsum('bqd,bkd->bqk', q[:, :, sl], k[:, :, sl],
                               preferred_element_type=jnp.float32) * scale
                # TODO(synk): additive attention mask (forward is called with mask=None)
                s = s - jnp.max(s, axis=-1, keepdims=True)
                p = jnp.exp(s)
                p = p * pl.reciprocal(jnp.sum(p, axis=-1, keepdims=True), approx=False)
                head_outs.append(jnp.einsum('bqk,bkd->bqd', p, v[:, :, sl],
                                            preferred_element_type=jnp.float32))
            vals = jnp.concatenate(head_outs, axis=-1).reshape(B * S, D)
            attn = jnp.dot(vals, wproj_ref[l],
                           preferred_element_type=jnp.float32) + bproj_ref[l]

            # ---- residual + norm1 ----
            x2 = _layernorm_k(xv + attn, g1_ref[l], be1_ref[l], EPS)

            # ---- position-wise feed-forward (dropout = identity) ----
            h1 = jnp.maximum(
                jnp.dot(x2, w1_ref[l], preferred_element_type=jnp.float32) + b1_ref[l],
                0.0)
            ffn = jnp.dot(h1, w2_ref[l], preferred_element_type=jnp.float32) + b2_ref[l]

            # ---- residual + norm2 ----
            xv = _layernorm_k(x2 + ffn, g2_ref[l], be2_ref[l], EPS)

        # ---- final encoder LayerNorm ----
        o_ref[...] = _layernorm_k(xv, gf_ref[...], bf_ref[...], EPS)

    n_in = 1 + 12 + 2   # x, 12 stacked per-layer params, final gamma/beta
    out2d = pl.pallas_call(
        kernel,
        out_shape=jax.ShapeDtypeStruct((B * S, D), x.dtype),
        in_specs=[pl.BlockSpec(memory_space=pltpu.MemorySpace.VMEM)
                  for _ in range(n_in)],
        out_specs=pl.BlockSpec(memory_space=pltpu.MemorySpace.VMEM),
    )(x.reshape(B * S, D), *stacked, final_gamma, final_beta)
    return out2d.reshape(B, S, D)


# ---------------- parameter init (deterministic, PyTorch-Linear-style uniform) --------------
def init_params(key):
    def unif(k, shape, fan_in):
        bound = 1.0 / math.sqrt(fan_in)
        return jax.random.uniform(k, shape, jnp.float32, -bound, bound)

    layer_params = []
    for _ in range(NUM_LAYERS):
        key, *ks = jax.random.split(key, 9)
        wqkv = unif(ks[0], (D_MODEL, 3 * D_MODEL), D_MODEL)
        bqkv = unif(ks[1], (1, 3 * D_MODEL), D_MODEL)
        wproj = unif(ks[2], (D_MODEL, D_MODEL), D_MODEL)
        bproj = unif(ks[3], (1, D_MODEL), D_MODEL)
        w1 = unif(ks[4], (D_MODEL, D_FF), D_MODEL)
        b1 = unif(ks[5], (1, D_FF), D_MODEL)
        w2 = unif(ks[6], (D_FF, D_MODEL), D_FF)
        b2 = unif(ks[7], (1, D_MODEL), D_FF)
        g1 = jnp.ones((1, D_MODEL), jnp.float32)
        be1 = jnp.zeros((1, D_MODEL), jnp.float32)
        g2 = jnp.ones((1, D_MODEL), jnp.float32)
        be2 = jnp.zeros((1, D_MODEL), jnp.float32)
        layer_params.append((wqkv, bqkv, wproj, bproj, g1, be1,
                             w1, b1, w2, b2, g2, be2))
    final_gamma = jnp.ones((1, D_MODEL), jnp.float32)
    final_beta = jnp.zeros((1, D_MODEL), jnp.float32)
    return key, layer_params, final_gamma, final_beta


# ---------------- pure-JAX reference (PyTorch-faithful, interleaved qkv layout) -------------
def ref_encoder(x, layer_params, final_gamma, final_beta):
    B, S, D = x.shape
    for (wqkv, bqkv, wproj, bproj, g1, be1, w1, b1, w2, b2, g2, be2) in layer_params:
        qkv = x @ wqkv + bqkv[0]
        qkv = qkv.reshape(B, S, NUM_HEADS, 3 * HEAD_DIM)
        q, k, v = jnp.split(qkv, 3, axis=-1)
        q, k, v = [t.transpose(0, 2, 1, 3) for t in (q, k, v)]
        s = jnp.einsum('bhqd,bhkd->bhqk', q, k) / math.sqrt(HEAD_DIM)
        a = jax.nn.softmax(s, axis=-1)
        vals = jnp.einsum('bhqk,bhkd->bhqd', a, v).transpose(0, 2, 1, 3).reshape(B, S, D)
        attn = vals @ wproj + bproj[0]
        x2 = _layernorm_ref(x + attn, g1[0], be1[0], EPS)
        h1 = jnp.maximum(x2 @ w1 + b1[0], 0.0)
        ffn = h1 @ w2 + b2[0]
        x = _layernorm_ref(x2 + ffn, g2[0], be2[0], EPS)
    return _layernorm_ref(x, final_gamma[0], final_beta[0], EPS)


if __name__ == "__main__":
    key = jax.random.PRNGKey(0)
    key, layer_params, final_gamma, final_beta = init_params(key)
    key, xk = jax.random.split(key)
    x = jax.random.normal(xk, (BATCH, SEQ, D_MODEL), jnp.float32)

    out = encoder_forward(x, layer_params, final_gamma, final_beta)
    out = jax.block_until_ready(out)

    ref = ref_encoder(x, layer_params, final_gamma, final_beta)
    assert out.shape == (BATCH, SEQ, D_MODEL)
    assert jnp.allclose(out, ref, atol=1e-4, rtol=1e-4), "mismatch vs reference"
    print("KERNEL_OK")
</pallas_src>

<mosaic_0001>
module attributes {stable_mosaic.version = 11 : i64} {
  func.func @kernel(%arg0: memref<16x32xf32, #tpu.memory_space<vmem>>, %arg1: memref<2x32x96xf32, #tpu.memory_space<vmem>>, %arg2: memref<2x1x96xf32, #tpu.memory_space<vmem>>, %arg3: memref<2x32x32xf32, #tpu.memory_space<vmem>>, %arg4: memref<2x1x32xf32, #tpu.memory_space<vmem>>, %arg5: memref<2x1x32xf32, #tpu.memory_space<vmem>>, %arg6: memref<2x1x32xf32, #tpu.memory_space<vmem>>, %arg7: memref<2x32x64xf32, #tpu.memory_space<vmem>>, %arg8: memref<2x1x64xf32, #tpu.memory_space<vmem>>, %arg9: memref<2x64x32xf32, #tpu.memory_space<vmem>>, %arg10: memref<2x1x32xf32, #tpu.memory_space<vmem>>, %arg11: memref<2x1x32xf32, #tpu.memory_space<vmem>>, %arg12: memref<2x1x32xf32, #tpu.memory_space<vmem>>, %arg13: memref<1x32xf32, #tpu.memory_space<vmem>>, %arg14: memref<1x32xf32, #tpu.memory_space<vmem>>, %arg15: memref<16x32xf32, #tpu.memory_space<vmem>>) attributes {dimension_semantics = [], scalar_prefetch = 0 : i64, scratch_operands = 0 : i64, tpu.core_type = #tpu.core_type<tc>} {
    %c0 = arith.constant 0 : index
    %c0_0 = arith.constant 0 : index
    %0 = vector.load %arg0[%c0, %c0_0] : memref<16x32xf32, #tpu.memory_space<vmem>>, vector<16x32xf32>
    %c0_1 = arith.constant 0 : index
    %c0_2 = arith.constant 0 : index
    %c0_3 = arith.constant 0 : index
    %1 = vector.load %arg1[%c0_1, %c0_2, %c0_3] : memref<2x32x96xf32, #tpu.memory_space<vmem>>, vector<1x32x96xf32>
    %2 = vector.shape_cast %1 : vector<1x32x96xf32> to vector<32x96xf32>
    %cst = arith.constant dense<0.000000e+00> : vector<16x96xf32>
    %3 = tpu.matmul %0, %2, %cst {dimension_numbers = #tpu.dot_dimension_numbers<[1], [0], [0], [1], [0, 0, 1, 1], [], []>} : vector<16x32xf32>, vector<32x96xf32>, vector<16x96xf32> -> vector<16x96xf32>
    %c0_4 = arith.constant 0 : index
    %c0_5 = arith.constant 0 : index
    %c0_6 = arith.constant 0 : index
    %4 = vector.load %arg2[%c0_4, %c0_5, %c0_6] : memref<2x1x96xf32, #tpu.memory_space<vmem>>, vector<1x1x96xf32>
    %5 = vector.shape_cast %4 : vector<1x1x96xf32> to vector<1x96xf32>
    %6 = vector.broadcast %5 : vector<1x96xf32> to vector<16x96xf32>
    %7 = arith.addf %3, %6 : vector<16x96xf32>
    %8 = vector.extract_strided_slice %7 {offsets = [0, 0], sizes = [16, 32], strides = [1, 1]} : vector<16x96xf32> to vector<16x32xf32>
    %9 = vector.shape_cast %8 : vector<16x32xf32> to vector<2x8x32xf32>
    %10 = vector.extract_strided_slice %7 {offsets = [0, 32], sizes = [16, 32], strides = [1, 1]} : vector<16x96xf32> to vector<16x32xf32>
    %11 = vector.shape_cast %10 : vector<16x32xf32> to vector<2x8x32xf32>
    %12 = vector.extract_strided_slice %7 {offsets = [0, 64], sizes = [16, 32], strides = [1, 1]} : vector<16x96xf32> to vector<16x32xf32>
    %13 = vector.shape_cast %12 : vector<16x32xf32> to vector<2x8x32xf32>
    %14 = vector.extract_strided_slice %9 {offsets = [0, 0, 0], sizes = [2, 8, 8], strides = [1, 1, 1]} : vector<2x8x32xf32> to vector<2x8x8xf32>
    %15 = vector.extract_strided_slice %11 {offsets = [0, 0, 0], sizes = [2, 8, 8], strides = [1, 1, 1]} : vector<2x8x32xf32> to vector<2x8x8xf32>
    "tpu.trace_start"() <{level = 10 : i32, message = "bqd,bkd->bqk"}> : () -> ()
    %cst_7 = arith.constant dense<0.000000e+00> : vector<2x8x8xf32>
    %16 = tpu.matmul %14, %15, %cst_7 {dimension_numbers = #tpu.dot_dimension_numbers<[2], [2], [1], [1], [0, 0, 0, 1, 1, 1], [0], [0]>} : vector<2x8x8xf32>, vector<2x8x8xf32>, vector<2x8x8xf32> -> vector<2x8x8xf32>
    "tpu.trace_stop"() : () -> ()
    %cst_8 = arith.constant 0.353553385 : f32
    %17 = vector.broadcast %cst_8 : f32 to vector<2x8x8xf32>
    %18 = arith.mulf %16, %17 : vector<2x8x8xf32>
    %cst_9 = arith.constant dense<0xFF800000> : vector<2x8xf32>
    %19 = vector.multi_reduction <maximumf>, %18, %cst_9 [2] : vector<2x8x8xf32> to vector<2x8xf32>
    %20 = vector.shape_cast %19 : vector<2x8xf32> to vector<2x8x1xf32>
    %21 = vector.broadcast %20 : vector<2x8x1xf32> to vector<2x8x8xf32>
    %22 = arith.subf %18, %21 : vector<2x8x8xf32>
    %23 = math.exp %22 : vector<2x8x8xf32>
    %cst_10 = arith.constant dense<0.000000e+00> : vector<2x8xf32>
    %24 = vector.multi_reduction <add>, %23, %cst_10 [2] : vector<2x8x8xf32> to vector<2x8xf32>
    %25 = vector.shape_cast %24 : vector<2x8xf32> to vector<2x8x1xf32>
    %26 = tpu.reciprocal %25 : vector<2x8x1xf32> -> vector<2x8x1xf32>
    %27 = vector.broadcast %26 : vector<2x8x1xf32> to vector<2x8x8xf32>
    %28 = arith.mulf %23, %27 : vector<2x8x8xf32>
    %29 = vector.extract_strided_slice %13 {offsets = [0, 0, 0], sizes = [2, 8, 8], strides = [1, 1, 1]} : vector<2x8x32xf32> to vector<2x8x8xf32>
    "tpu.trace_start"() <{level = 10 : i32, message = "bqk,bkd->bqd"}> : () -> ()
    %cst_11 = arith.constant dense<0.000000e+00> : vector<2x8x8xf32>
    %30 = tpu.matmul %28, %29, %cst_11 {dimension_numbers = #tpu.dot_dimension_numbers<[2], [1], [1], [2], [0, 0, 0, 1, 1, 2], [0], [0]>} : vector<2x8x8xf32>, vector<2x8x8xf32>, vector<2x8x8xf32> -> vector<2x8x8xf32>
    "tpu.trace_stop"() : () -> ()
    %31 = vector.extract_strided_slice %9 {offsets = [0, 0, 8], sizes = [2, 8, 8], strides = [1, 1, 1]} : vector<2x8x32xf32> to vector<2x8x8xf32>
    %32 = vector.extract_strided_slice %11 {offsets = [0, 0, 8], sizes = [2, 8, 8], strides = [1, 1, 1]} : vector<2x8x32xf32> to vector<2x8x8xf32>
    "tpu.trace_start"() <{level = 10 : i32, message = "bqd,bkd->bqk"}> : () -> ()
    %cst_12 = arith.constant dense<0.000000e+00> : vector<2x8x8xf32>
    %33 = tpu.matmul %31, %32, %cst_12 {dimension_numbers = #tpu.dot_dimension_numbers<[2], [2], [1], [1], [0, 0, 0, 1, 1, 1], [0], [0]>} : vector<2x8x8xf32>, vector<2x8x8xf32>, vector<2x8x8xf32> -> vector<2x8x8xf32>
    "tpu.trace_stop"() : () -> ()
    %cst_13 = arith.constant 0.353553385 : f32
    %34 = vector.broadcast %cst_13 : f32 to vector<2x8x8xf32>
    %35 = arith.mulf %33, %34 : vector<2x8x8xf32>
    %cst_14 = arith.constant dense<0xFF800000> : vector<2x8xf32>
    %36 = vector.multi_reduction <maximumf>, %35, %cst_14 [2] : vector<2x8x8xf32> to vector<2x8xf32>
    %37 = vector.shape_cast %36 : vector<2x8xf32> to vector<2x8x1xf32>
    %38 = vector.broadcast %37 : vector<2x8x1xf32> to vector<2x8x8xf32>
    %39 = arith.subf %35, %38 : vector<2x8x8xf32>
    %40 = math.exp %39 : vector<2x8x8xf32>
    %cst_15 = arith.constant dense<0.000000e+00> : vector<2x8xf32>
    %41 = vector.multi_reduction <add>, %40, %cst_15 [2] : vector<2x8x8xf32> to vector<2x8xf32>
    %42 = vector.shape_cast %41 : vector<2x8xf32> to vector<2x8x1xf32>
    %43 = tpu.reciprocal %42 : vector<2x8x1xf32> -> vector<2x8x1xf32>
    %44 = vector.broadcast %43 : vector<2x8x1xf32> to vector<2x8x8xf32>
    %45 = arith.mulf %40, %44 : vector<2x8x8xf32>
    %46 = vector.extract_strided_slice %13 {offsets = [0, 0, 8], sizes = [2, 8, 8], strides = [1, 1, 1]} : vector<2x8x32xf32> to vector<2x8x8xf32>
    "tpu.trace_start"() <{level = 10 : i32, message = "bqk,bkd->bqd"}> : () -> ()
    %cst_16 = arith.constant dense<0.000000e+00> : vector<2x8x8xf32>
    %47 = tpu.matmul %45, %46, %cst_16 {dimension_numbers = #tpu.dot_dimension_numbers<[2], [1], [1], [2], [0, 0, 0, 1, 1, 2], [0], [0]>} : vector<2x8x8xf32>, vector<2x8x8xf32>, vector<2x8x8xf32> -> vector<2x8x8xf32>
    "tpu.trace_stop"() : () -> ()
    %48 = vector.extract_strided_slice %9 {offsets = [0, 0, 16], sizes = [2, 8, 8], strides = [1, 1, 1]} : vector<2x8x32xf32> to vector<2x8x8xf32>
    %49 = vector.extract_strided_slice %11 {offsets = [0, 0, 16], sizes = [2, 8, 8], strides = [1, 1, 1]} : vector<2x8x32xf32> to vector<2x8x8xf32>
    "tpu.trace_start"() <{level = 10 : i32, message = "bqd,bkd->bqk"}> : () -> ()
    %cst_17 = arith.constant dense<0.000000e+00> : vector<2x8x8xf32>
    %50 = tpu.matmul %48, %49, %cst_17 {dimension_numbers = #tpu.dot_dimension_numbers<[2], [2], [1], [1], [0, 0, 0, 1, 1, 1], [0], [0]>} : vector<2x8x8xf32>, vector<2x8x8xf32>, vector<2x8x8xf32> -> vector<2x8x8xf32>
    "tpu.trace_stop"() : () -> ()
    %cst_18 = arith.constant 0.353553385 : f32
    %51 = vector.broadcast %cst_18 : f32 to vector<2x8x8xf32>
    %52 = arith.mulf %50, %51 : vector<2x8x8xf32>
    %cst_19 = arith.constant dense<0xFF800000> : vector<2x8xf32>
    %53 = vector.multi_reduction <maximumf>, %52, %cst_19 [2] : vector<2x8x8xf32> to vector<2x8xf32>
    %54 = vector.shape_cast %53 : vector<2x8xf32> to vector<2x8x1xf32>
    %55 = vector.broadcast %54 : vector<2x8x1xf32> to vector<2x8x8xf32>
    %56 = arith.subf %52, %55 : vector<2x8x8xf32>
    %57 = math.exp %56 : vector<2x8x8xf32>
    %cst_20 = arith.constant dense<0.000000e+00> : vector<2x8xf32>
    %58 = vector.multi_reduction <add>, %57, %cst_20 [2] : vector<2x8x8xf32> to vector<2x8xf32>
    %59 = vector.shape_cast %58 : vector<2x8xf32> to vector<2x8x1xf32>
    %60 = tpu.reciprocal %59 : vector<2x8x1xf32> -> vector<2x8x1xf32>
    %61 = vector.broadcast %60 : vector<2x8x1xf32> to vector<2x8x8xf32>
    %62 = arith.mulf %57, %61 : vector<2x8x8xf32>
    %63 = vector.extract_strided_slice %13 {offsets = [0, 0, 16], sizes = [2, 8, 8], strides = [1, 1, 1]} : vector<2x8x32xf32> to vector<2x8x8xf32>
    "tpu.trace_start"() <{level = 10 : i32, message = "bqk,bkd->bqd"}> : () -> ()
    %cst_21 = arith.constant dense<0.000000e+00> : vector<2x8x8xf32>
    %64 = tpu.matmul %62, %63, %cst_21 {dimension_numbers = #tpu.dot_dimension_numbers<[2], [1], [1], [2], [0, 0, 0, 1, 1, 2], [0], [0]>} : vector<2x8x8xf32>, vector<2x8x8xf32>, vector<2x8x8xf32> -> vector<2x8x8xf32>
    "tpu.trace_stop"() : () -> ()
    %65 = vector.extract_strided_slice %9 {offsets = [0, 0, 24], sizes = [2, 8, 8], strides = [1, 1, 1]} : vector<2x8x32xf32> to vector<2x8x8xf32>
    %66 = vector.extract_strided_slice %11 {offsets = [0, 0, 24], sizes = [2, 8, 8], strides = [1, 1, 1]} : vector<2x8x32xf32> to vector<2x8x8xf32>
    "tpu.trace_start"() <{level = 10 : i32, message = "bqd,bkd->bqk"}> : () -> ()
    %cst_22 = arith.constant dense<0.000000e+00> : vector<2x8x8xf32>
    %67 = tpu.matmul %65, %66, %cst_22 {dimension_numbers = #tpu.dot_dimension_numbers<[2], [2], [1], [1], [0, 0, 0, 1, 1, 1], [0], [0]>} : vector<2x8x8xf32>, vector<2x8x8xf32>, vector<2x8x8xf32> -> vector<2x8x8xf32>
    "tpu.trace_stop"() : () -> ()
    %cst_23 = arith.constant 0.353553385 : f32
    %68 = vector.broadcast %cst_23 : f32 to vector<2x8x8xf32>
    %69 = arith.mulf %67, %68 : vector<2x8x8xf32>
    %cst_24 = arith.constant dense<0xFF800000> : vector<2x8xf32>
    %70 = vector.multi_reduction <maximumf>, %69, %cst_24 [2] : vector<2x8x8xf32> to vector<2x8xf32>
    %71 = vector.shape_cast %70 : vector<2x8xf32> to vector<2x8x1xf32>
    %72 = vector.broadcast %71 : vector<2x8x1xf32> to vector<2x8x8xf32>
    %73 = arith.subf %69, %72 : vector<2x8x8xf32>
    %74 = math.exp %73 : vector<2x8x8xf32>
    %cst_25 = arith.constant dense<0.000000e+00> : vector<2x8xf32>
    %75 = vector.multi_reduction <add>, %74, %cst_25 [2] : vector<2x8x8xf32> to vector<2x8xf32>
    %76 = vector.shape_cast %75 : vector<2x8xf32> to vector<2x8x1xf32>
    %77 = tpu.reciprocal %76 : vector<2x8x1xf32> -> vector<2x8x1xf32>
    %78 = vector.broadcast %77 : vector<2x8x1xf32> to vector<2x8x8xf32>
    %79 = arith.mulf %74, %78 : vector<2x8x8xf32>
    %80 = vector.extract_strided_slice %13 {offsets = [0, 0, 24], sizes = [2, 8, 8], strides = [1, 1, 1]} : vector<2x8x32xf32> to vector<2x8x8xf32>
    "tpu.trace_start"() <{level = 10 : i32, message = "bqk,bkd->bqd"}> : () -> ()
    %cst_26 = arith.constant dense<0.000000e+00> : vector<2x8x8xf32>
    %81 = tpu.matmul %79, %80, %cst_26 {dimension_numbers = #tpu.dot_dimension_numbers<[2], [1], [1], [2], [0, 0, 0, 1, 1, 2], [0], [0]>} : vector<2x8x8xf32>, vector<2x8x8xf32>, vector<2x8x8xf32> -> vector<2x8x8xf32>
    "tpu.trace_stop"() : () -> ()
    %82 = tpu.concatenate %30, %47, %64, %81 in 2 : vector<2x8x8xf32>, vector<2x8x8xf32>, vector<2x8x8xf32>, vector<2x8x8xf32> -> vector<2x8x32xf32>
    %83 = vector.shape_cast %82 : vector<2x8x32xf32> to vector<16x32xf32>
    %c0_27 = arith.constant 0 : index
    %c0_28 = arith.constant 0 : index
    %c0_29 = arith.constant 0 : index
    %84 = vector.load %arg3[%c0_27, %c0_28, %c0_29] : memref<2x32x32xf32, #tpu.memory_space<vmem>>, vector<1x32x32xf32>
    %85 = vector.shape_cast %84 : vector<1x32x32xf32> to vector<32x32xf32>
    %cst_30 = arith.constant dense<0.000000e+00> : vector<16x32xf32>
    %86 = tpu.matmul %83, %85, %cst_30 {dimension_numbers = #tpu.dot_dimension_numbers<[1], [0], [0], [1], [0, 0, 1, 1], [], []>} : vector<16x32xf32>, vector<32x32xf32>, vector<16x32xf32> -> vector<16x32xf32>
    %c0_31 = arith.constant 0 : index
    %c0_32 = arith.constant 0 : index
    %c0_33 = arith.constant 0 : index
    %87 = vector.load %arg4[%c0_31, %c0_32, %c0_33] : memref<2x1x32xf32, #tpu.memory_space<vmem>>, vector<1x1x32xf32>
    %88 = vector.shape_cast %87 : vector<1x1x32xf32> to vector<1x32xf32>
    %89 = vector.broadcast %88 : vector<1x32xf32> to vector<16x32xf32>
    %90 = arith.addf %86, %89 : vector<16x32xf32>
    %91 = arith.addf %0, %90 : vector<16x32xf32>
    %c0_34 = arith.constant 0 : index
    %c0_35 = arith.constant 0 : index
    %c0_36 = arith.constant 0 : index
    %92 = vector.load %arg5[%c0_34, %c0_35, %c0_36] : memref<2x1x32xf32, #tpu.memory_space<vmem>>, vector<1x1x32xf32>
    %93 = vector.shape_cast %92 : vector<1x1x32xf32> to vector<1x32xf32>
    %c0_37 = arith.constant 0 : index
    %c0_38 = arith.constant 0 : index
    %c0_39 = arith.constant 0 : index
    %94 = vector.load %arg6[%c0_37, %c0_38, %c0_39] : memref<2x1x32xf32, #tpu.memory_space<vmem>>, vector<1x1x32xf32>
    %95 = vector.shape_cast %94 : vector<1x1x32xf32> to vector<1x32xf32>
    %cst_40 = arith.constant dense<0.000000e+00> : vector<16xf32>
    %96 = vector.multi_reduction <add>, %91, %cst_40 [1] : vector<16x32xf32> to vector<16xf32>
    %97 = vector.shape_cast %96 : vector<16xf32> to vector<16x1xf32>
    %cst_41 = arith.constant 3.200000e+01 : f32
    %98 = vector.broadcast %cst_41 : f32 to vector<16x1xf32>
    %99 = arith.divf %97, %98 : vector<16x1xf32>
    %100 = vector.broadcast %99 : vector<16x1xf32> to vector<16x32xf32>
    %101 = arith.subf %91, %100 : vector<16x32xf32>
    %102 = arith.mulf %101, %101 : vector<16x32xf32>
    %cst_42 = arith.constant dense<0.000000e+00> : vector<16xf32>
    %103 = vector.multi_reduction <add>, %102, %cst_42 [1] : vector<16x32xf32> to vector<16xf32>
    %104 = vector.shape_cast %103 : vector<16xf32> to vector<16x1xf32>
    %cst_43 = arith.constant 0.0322580636 : f32
    %105 = vector.broadcast %cst_43 : f32 to vector<16x1xf32>
    %106 = arith.mulf %104, %105 : vector<16x1xf32>
    %107 = math.sqrt %106 : vector<16x1xf32>
    %108 = vector.broadcast %99 : vector<16x1xf32> to vector<16x32xf32>
    %109 = arith.subf %91, %108 : vector<16x32xf32>
    %110 = vector.broadcast %93 : vector<1x32xf32> to vector<16x32xf32>
    %111 = arith.mulf %110, %109 : vector<16x32xf32>
    %cst_44 = arith.constant 9.99999997E-7 : f32
    %112 = vector.broadcast %cst_44 : f32 to vector<16x1xf32>
    %113 = arith.addf %107, %112 : vector<16x1xf32>
    %114 = tpu.reciprocal %113 : vector<16x1xf32> -> vector<16x1xf32>
    %115 = vector.broadcast %114 : vector<16x1xf32> to vector<16x32xf32>
    %116 = arith.mulf %111, %115 : vector<16x32xf32>
    %117 = vector.broadcast %95 : vector<1x32xf32> to vector<16x32xf32>
    %118 = arith.addf %116, %117 : vector<16x32xf32>
    %c0_45 = arith.constant 0 : index
    %c0_46 = arith.constant 0 : index
    %c0_47 = arith.constant 0 : index
    %119 = vector.load %arg7[%c0_45, %c0_46, %c0_47] : memref<2x32x64xf32, #tpu.memory_space<vmem>>, vector<1x32x64xf32>
    %120 = vector.shape_cast %119 : vector<1x32x64xf32> to vector<32x64xf32>
    %cst_48 = arith.constant dense<0.000000e+00> : vector<16x64xf32>
    %121 = tpu.matmul %118, %120, %cst_48 {dimension_numbers = #tpu.dot_dimension_numbers<[1], [0], [0], [1], [0, 0, 1, 1], [], []>} : vector<16x32xf32>, vector<32x64xf32>, vector<16x64xf32> -> vector<16x64xf32>
    %c0_49 = arith.constant 0 : index
    %c0_50 = arith.constant 0 : index
    %c0_51 = arith.constant 0 : index
    %122 = vector.load %arg8[%c0_49, %c0_50, %c0_51] : memref<2x1x64xf32, #tpu.memory_space<vmem>>, vector<1x1x64xf32>
    %123 = vector.shape_cast %122 : vector<1x1x64xf32> to vector<1x64xf32>
    %124 = vector.broadcast %123 : vector<1x64xf32> to vector<16x64xf32>
    %125 = arith.addf %121, %124 : vector<16x64xf32>
    %cst_52 = arith.constant 0.000000e+00 : f32
    %126 = vector.broadcast %cst_52 : f32 to vector<16x64xf32>
    %127 = arith.maximumf %125, %126 : vector<16x64xf32>
    %c0_53 = arith.constant 0 : index
    %c0_54 = arith.constant 0 : index
    %c0_55 = arith.constant 0 : index
    %128 = vector.load %arg9[%c0_53, %c0_54, %c0_55] : memref<2x64x32xf32, #tpu.memory_space<vmem>>, vector<1x64x32xf32>
    %129 = vector.shape_cast %128 : vector<1x64x32xf32> to vector<64x32xf32>
    %cst_56 = arith.constant dense<0.000000e+00> : vector<16x32xf32>
    %130 = tpu.matmul %127, %129, %cst_56 {dimension_numbers = #tpu.dot_dimension_numbers<[1], [0], [0], [1], [0, 0, 1, 1], [], []>} : vector<16x64xf32>, vector<64x32xf32>, vector<16x32xf32> -> vector<16x32xf32>
    %c0_57 = arith.constant 0 : index
    %c0_58 = arith.constant 0 : index
    %c0_59 = arith.constant 0 : index
    %131 = vector.load %arg10[%c0_57, %c0_58, %c0_59] : memref<2x1x32xf32, #tpu.memory_space<vmem>>, vector<1x1x32xf32>
    %132 = vector.shape_cast %131 : vector<1x1x32xf32> to vector<1x32xf32>
    %133 = vector.broadcast %132 : vector<1x32xf32> to vector<16x32xf32>
    %134 = arith.addf %130, %133 : vector<16x32xf32>
    %135 = arith.addf %118, %134 : vector<16x32xf32>
    %c0_60 = arith.constant 0 : index
    %c0_61 = arith.constant 0 : index
    %c0_62 = arith.constant 0 : index
    %136 = vector.load %arg11[%c0_60, %c0_61, %c0_62] : memref<2x1x32xf32, #tpu.memory_space<vmem>>, vector<1x1x32xf32>
    %137 = vector.shape_cast %136 : vector<1x1x32xf32> to vector<1x32xf32>
    %c0_63 = arith.constant 0 : index
    %c0_64 = arith.constant 0 : index
    %c0_65 = arith.constant 0 : index
    %138 = vector.load %arg12[%c0_63, %c0_64, %c0_65] : memref<2x1x32xf32, #tpu.memory_space<vmem>>, vector<1x1x32xf32>
    %139 = vector.shape_cast %138 : vector<1x1x32xf32> to vector<1x32xf32>
    %cst_66 = arith.constant dense<0.000000e+00> : vector<16xf32>
    %140 = vector.multi_reduction <add>, %135, %cst_66 [1] : vector<16x32xf32> to vector<16xf32>
    %141 = vector.shape_cast %140 : vector<16xf32> to vector<16x1xf32>
    %cst_67 = arith.constant 3.200000e+01 : f32
    %142 = vector.broadcast %cst_67 : f32 to vector<16x1xf32>
    %143 = arith.divf %141, %142 : vector<16x1xf32>
    %144 = vector.broadcast %143 : vector<16x1xf32> to vector<16x32xf32>
    %145 = arith.subf %135, %144 : vector<16x32xf32>
    %146 = arith.mulf %145, %145 : vector<16x32xf32>
    %cst_68 = arith.constant dense<0.000000e+00> : vector<16xf32>
    %147 = vector.multi_reduction <add>, %146, %cst_68 [1] : vector<16x32xf32> to vector<16xf32>
    %148 = vector.shape_cast %147 : vector<16xf32> to vector<16x1xf32>
    %cst_69 = arith.constant 0.0322580636 : f32
    %149 = vector.broadcast %cst_69 : f32 to vector<16x1xf32>
    %150 = arith.mulf %148, %149 : vector<16x1xf32>
    %151 = math.sqrt %150 : vector<16x1xf32>
    %152 = vector.broadcast %143 : vector<16x1xf32> to vector<16x32xf32>
    %153 = arith.subf %135, %152 : vector<16x32xf32>
    %154 = vector.broadcast %137 : vector<1x32xf32> to vector<16x32xf32>
    %155 = arith.mulf %154, %153 : vector<16x32xf32>
    %cst_70 = arith.constant 9.99999997E-7 : f32
    %156 = vector.broadcast %cst_70 : f32 to vector<16x1xf32>
    %157 = arith.addf %151, %156 : vector<16x1xf32>
    %158 = tpu.reciprocal %157 : vector<16x1xf32> -> vector<16x1xf32>
    %159 = vector.broadcast %158 : vector<16x1xf32> to vector<16x32xf32>
    %160 = arith.mulf %155, %159 : vector<16x32xf32>
    %161 = vector.broadcast %139 : vector<1x32xf32> to vector<16x32xf32>
    %162 = arith.addf %160, %161 : vector<16x32xf32>
    %c1 = arith.constant 1 : index
    %c0_71 = arith.constant 0 : index
    %c0_72 = arith.constant 0 : index
    %163 = vector.load %arg1[%c1, %c0_71, %c0_72] : memref<2x32x96xf32, #tpu.memory_space<vmem>>, vector<1x32x96xf32>
    %164 = vector.shape_cast %163 : vector<1x32x96xf32> to vector<32x96xf32>
    %cst_73 = arith.constant dense<0.000000e+00> : vector<16x96xf32>
    %165 = tpu.matmul %162, %164, %cst_73 {dimension_numbers = #tpu.dot_dimension_numbers<[1], [0], [0], [1], [0, 0, 1, 1], [], []>} : vector<16x32xf32>, vector<32x96xf32>, vector<16x96xf32> -> vector<16x96xf32>
    %c1_74 = arith.constant 1 : index
    %c0_75 = arith.constant 0 : index
    %c0_76 = arith.constant 0 : index
    %166 = vector.load %arg2[%c1_74, %c0_75, %c0_76] : memref<2x1x96xf32, #tpu.memory_space<vmem>>, vector<1x1x96xf32>
    %167 = vector.shape_cast %166 : vector<1x1x96xf32> to vector<1x96xf32>
    %168 = vector.broadcast %167 : vector<1x96xf32> to vector<16x96xf32>
    %169 = arith.addf %165, %168 : vector<16x96xf32>
    %170 = vector.extract_strided_slice %169 {offsets = [0, 0], sizes = [16, 32], strides = [1, 1]} : vector<16x96xf32> to vector<16x32xf32>
    %171 = vector.shape_cast %170 : vector<16x32xf32> to vector<2x8x32xf32>
    %172 = vector.extract_strided_slice %169 {offsets = [0, 32], sizes = [16, 32], strides = [1, 1]} : vector<16x96xf32> to vector<16x32xf32>
    %173 = vector.shape_cast %172 : vector<16x32xf32> to vector<2x8x32xf32>
    %174 = vector.extract_strided_slice %169 {offsets = [0, 64], sizes = [16, 32], strides = [1, 1]} : vector<16x96xf32> to vector<16x32xf32>
    %175 = vector.shape_cast %174 : vector<16x32xf32> to vector<2x8x32xf32>
    %176 = vector.extract_strided_slice %171 {offsets = [0, 0, 0], sizes = [2, 8, 8], strides = [1, 1, 1]} : vector<2x8x32xf32> to vector<2x8x8xf32>
    %177 = vector.extract_strided_slice %173 {offsets = [0, 0, 0], sizes = [2, 8, 8], strides = [1, 1, 1]} : vector<2x8x32xf32> to vector<2x8x8xf32>
    "tpu.trace_start"() <{level = 10 : i32, message = "bqd,bkd->bqk"}> : () -> ()
    %cst_77 = arith.constant dense<0.000000e+00> : vector<2x8x8xf32>
    %178 = tpu.matmul %176, %177, %cst_77 {dimension_numbers = #tpu.dot_dimension_numbers<[2], [2], [1], [1], [0, 0, 0, 1, 1, 1], [0], [0]>} : vector<2x8x8xf32>, vector<2x8x8xf32>, vector<2x8x8xf32> -> vector<2x8x8xf32>
    "tpu.trace_stop"() : () -> ()
    %cst_78 = arith.constant 0.353553385 : f32
    %179 = vector.broadcast %cst_78 : f32 to vector<2x8x8xf32>
    %180 = arith.mulf %178, %179 : vector<2x8x8xf32>
    %cst_79 = arith.constant dense<0xFF800000> : vector<2x8xf32>
    %181 = vector.multi_reduction <maximumf>, %180, %cst_79 [2] : vector<2x8x8xf32> to vector<2x8xf32>
    %182 = vector.shape_cast %181 : vector<2x8xf32> to vector<2x8x1xf32>
    %183 = vector.broadcast %182 : vector<2x8x1xf32> to vector<2x8x8xf32>
    %184 = arith.subf %180, %183 : vector<2x8x8xf32>
    %185 = math.exp %184 : vector<2x8x8xf32>
    %cst_80 = arith.constant dense<0.000000e+00> : vector<2x8xf32>
    %186 = vector.multi_reduction <add>, %185, %cst_80 [2] : vector<2x8x8xf32> to vector<2x8xf32>
    %187 = vector.shape_cast %186 : vector<2x8xf32> to vector<2x8x1xf32>
    %188 = tpu.reciprocal %187 : vector<2x8x1xf32> -> vector<2x8x1xf32>
    %189 = vector.broadcast %188 : vector<2x8x1xf32> to vector<2x8x8xf32>
    %190 = arith.mulf %185, %189 : vector<2x8x8xf32>
    %191 = vector.extract_strided_slice %175 {offsets = [0, 0, 0], sizes = [2, 8, 8], strides = [1, 1, 1]} : vector<2x8x32xf32> to vector<2x8x8xf32>
    "tpu.trace_start"() <{level = 10 : i32, message = "bqk,bkd->bqd"}> : () -> ()
    %cst_81 = arith.constant dense<0.000000e+00> : vector<2x8x8xf32>
    %192 = tpu.matmul %190, %191, %cst_81 {dimension_numbers = #tpu.dot_dimension_numbers<[2], [1], [1], [2], [0, 0, 0, 1, 1, 2], [0], [0]>} : vector<2x8x8xf32>, vector<2x8x8xf32>, vector<2x8x8xf32> -> vector<2x8x8xf32>
    "tpu.trace_stop"() : () -> ()
    %193 = vector.extract_strided_slice %171 {offsets = [0, 0, 8], sizes = [2, 8, 8], strides = [1, 1, 1]} : vector<2x8x32xf32> to vector<2x8x8xf32>
    %194 = vector.extract_strided_slice %173 {offsets = [0, 0, 8], sizes = [2, 8, 8], strides = [1, 1, 1]} : vector<2x8x32xf32> to vector<2x8x8xf32>
    "tpu.trace_start"() <{level = 10 : i32, message = "bqd,bkd->bqk"}> : () -> ()
    %cst_82 = arith.constant dense<0.000000e+00> : vector<2x8x8xf32>
    %195 = tpu.matmul %193, %194, %cst_82 {dimension_numbers = #tpu.dot_dimension_numbers<[2], [2], [1], [1], [0, 0, 0, 1, 1, 1], [0], [0]>} : vector<2x8x8xf32>, vector<2x8x8xf32>, vector<2x8x8xf32> -> vector<2x8x8xf32>
    "tpu.trace_stop"() : () -> ()
    %cst_83 = arith.constant 0.353553385 : f32
    %196 = vector.broadcast %cst_83 : f32 to vector<2x8x8xf32>
    %197 = arith.mulf %195, %196 : vector<2x8x8xf32>
    %cst_84 = arith.constant dense<0xFF800000> : vector<2x8xf32>
    %198 = vector.multi_reduction <maximumf>, %197, %cst_84 [2] : vector<2x8x8xf32> to vector<2x8xf32>
    %199 = vector.shape_cast %198 : vector<2x8xf32> to vector<2x8x1xf32>
    %200 = vector.broadcast %199 : vector<2x8x1xf32> to vector<2x8x8xf32>
    %201 = arith.subf %197, %200 : vector<2x8x8xf32>
    %202 = math.exp %201 : vector<2x8x8xf32>
    %cst_85 = arith.constant dense<0.000000e+00> : vector<2x8xf32>
    %203 = vector.multi_reduction <add>, %202, %cst_85 [2] : vector<2x8x8xf32> to vector<2x8xf32>
    %204 = vector.shape_cast %203 : vector<2x8xf32> to vector<2x8x1xf32>
    %205 = tpu.reciprocal %204 : vector<2x8x1xf32> -> vector<2x8x1xf32>
    %206 = vector.broadcast %205 : vector<2x8x1xf32> to vector<2x8x8xf32>
    %207 = arith.mulf %202, %206 : vector<2x8x8xf32>
    %208 = vector.extract_strided_slice %175 {offsets = [0, 0, 8], sizes = [2, 8, 8], strides = [1, 1, 1]} : vector<2x8x32xf32> to vector<2x8x8xf32>
    "tpu.trace_start"() <{level = 10 : i32, message = "bqk,bkd->bqd"}> : () -> ()
    %cst_86 = arith.constant dense<0.000000e+00> : vector<2x8x8xf32>
    %209 = tpu.matmul %207, %208, %cst_86 {dimension_numbers = #tpu.dot_dimension_numbers<[2], [1], [1], [2], [0, 0, 0, 1, 1, 2], [0], [0]>} : vector<2x8x8xf32>, vector<2x8x8xf32>, vector<2x8x8xf32> -> vector<2x8x8xf32>
    "tpu.trace_stop"() : () -> ()
    %210 = vector.extract_strided_slice %171 {offsets = [0, 0, 16], sizes = [2, 8, 8], strides = [1, 1, 1]} : vector<2x8x32xf32> to vector<2x8x8xf32>
    %211 = vector.extract_strided_slice %173 {offsets = [0, 0, 16], sizes = [2, 8, 8], strides = [1, 1, 1]} : vector<2x8x32xf32> to vector<2x8x8xf32>
    "tpu.trace_start"() <{level = 10 : i32, message = "bqd,bkd->bqk"}> : () -> ()
    %cst_87 = arith.constant dense<0.000000e+00> : vector<2x8x8xf32>
    %212 = tpu.matmul %210, %211, %cst_87 {dimension_numbers = #tpu.dot_dimension_numbers<[2], [2], [1], [1], [0, 0, 0, 1, 1, 1], [0], [0]>} : vector<2x8x8xf32>, vector<2x8x8xf32>, vector<2x8x8xf32> -> vector<2x8x8xf32>
    "tpu.trace_stop"() : () -> ()
    %cst_88 = arith.constant 0.353553385 : f32
    %213 = vector.broadcast %cst_88 : f32 to vector<2x8x8xf32>
    %214 = arith.mulf %212, %213 : vector<2x8x8xf32>
    %cst_89 = arith.constant dense<0xFF800000> : vector<2x8xf32>
    %215 = vector.multi_reduction <maximumf>, %214, %cst_89 [2] : vector<2x8x8xf32> to vector<2x8xf32>
    %216 = vector.shape_cast %215 : vector<2x8xf32> to vector<2x8x1xf32>
    %217 = vector.broadcast %216 : vector<2x8x1xf32> to vector<2x8x8xf32>
    %218 = arith.subf %214, %217 : vector<2x8x8xf32>
    %219 = math.exp %218 : vector<2x8x8xf32>
    %cst_90 = arith.constant dense<0.000000e+00> : vector<2x8xf32>
    %220 = vector.multi_reduction <add>, %219, %cst_90 [2] : vector<2x8x8xf32> to vector<2x8xf32>
    %221 = vector.shape_cast %220 : vector<2x8xf32> to vector<2x8x1xf32>
    %222 = tpu.reciprocal %221 : vector<2x8x1xf32> -> vector<2x8x1xf32>
    %223 = vector.broadcast %222 : vector<2x8x1xf32> to vector<2x8x8xf32>
    %224 = arith.mulf %219, %223 : vector<2x8x8xf32>
    %225 = vector.extract_strided_slice %175 {offsets = [0, 0, 16], sizes = [2, 8, 8], strides = [1, 1, 1]} : vector<2x8x32xf32> to vector<2x8x8xf32>
    "tpu.trace_start"() <{level = 10 : i32, message = "bqk,bkd->bqd"}> : () -> ()
    %cst_91 = arith.constant dense<0.000000e+00> : vector<2x8x8xf32>
    %226 = tpu.matmul %224, %225, %cst_91 {dimension_numbers = #tpu.dot_dimension_numbers<[2], [1], [1], [2], [0, 0, 0, 1, 1, 2], [0], [0]>} : vector<2x8x8xf32>, vector<2x8x8xf32>, vector<2x8x8xf32> -> vector<2x8x8xf32>
    "tpu.trace_stop"() : () -> ()
    %227 = vector.extract_strided_slice %171 {offsets = [0, 0, 24], sizes = [2, 8, 8], strides = [1, 1, 1]} : vector<2x8x32xf32> to vector<2x8x8xf32>
    %228 = vector.extract_strided_slice %173 {offsets = [0, 0, 24], sizes = [2, 8, 8], strides = [1, 1, 1]} : vector<2x8x32xf32> to vector<2x8x8xf32>
    "tpu.trace_start"() <{level = 10 : i32, message = "bqd,bkd->bqk"}> : () -> ()
    %cst_92 = arith.constant dense<0.000000e+00> : vector<2x8x8xf32>
    %229 = tpu.matmul %227, %228, %cst_92 {dimension_numbers = #tpu.dot_dimension_numbers<[2], [2], [1], [1], [0, 0, 0, 1, 1, 1], [0], [0]>} : vector<2x8x8xf32>, vector<2x8x8xf32>, vector<2x8x8xf32> -> vector<2x8x8xf32>
    "tpu.trace_stop"() : () -> ()
    %cst_93 = arith.constant 0.353553385 : f32
    %230 = vector.broadcast %cst_93 : f32 to vector<2x8x8xf32>
    %231 = arith.mulf %229, %230 : vector<2x8x8xf32>
    %cst_94 = arith.constant dense<0xFF800000> : vector<2x8xf32>
    %232 = vector.multi_reduction <maximumf>, %231, %cst_94 [2] : vector<2x8x8xf32> to vector<2x8xf32>
    %233 = vector.shape_cast %232 : vector<2x8xf32> to vector<2x8x1xf32>
    %234 = vector.broadcast %233 : vector<2x8x1xf32> to vector<2x8x8xf32>
    %235 = arith.subf %231, %234 : vector<2x8x8xf32>
    %236 = math.exp %235 : vector<2x8x8xf32>
    %cst_95 = arith.constant dense<0.000000e+00> : vector<2x8xf32>
    %237 = vector.multi_reduction <add>, %236, %cst_95 [2] : vector<2x8x8xf32> to vector<2x8xf32>
    %238 = vector.shape_cast %237 : vector<2x8xf32> to vector<2x8x1xf32>
    %239 = tpu.reciprocal %238 : vector<2x8x1xf32> -> vector<2x8x1xf32>
    %240 = vector.broadcast %239 : vector<2x8x1xf32> to vector<2x8x8xf32>
    %241 = arith.mulf %236, %240 : vector<2x8x8xf32>
    %242 = vector.extract_strided_slice %175 {offsets = [0, 0, 24], sizes = [2, 8, 8], strides = [1, 1, 1]} : vector<2x8x32xf32> to vector<2x8x8xf32>
    "tpu.trace_start"() <{level = 10 : i32, message = "bqk,bkd->bqd"}> : () -> ()
    %cst_96 = arith.constant dense<0.000000e+00> : vector<2x8x8xf32>
    %243 = tpu.matmul %241, %242, %cst_96 {dimension_numbers = #tpu.dot_dimension_numbers<[2], [1], [1], [2], [0, 0, 0, 1, 1, 2], [0], [0]>} : vector<2x8x8xf32>, vector<2x8x8xf32>, vector<2x8x8xf32> -> vector<2x8x8xf32>
    "tpu.trace_stop"() : () -> ()
    %244 = tpu.concatenate %192, %209, %226, %243 in 2 : vector<2x8x8xf32>, vector<2x8x8xf32>, vector<2x8x8xf32>, vector<2x8x8xf32> -> vector<2x8x32xf32>
    %245 = vector.shape_cast %244 : vector<2x8x32xf32> to vector<16x32xf32>
    %c1_97 = arith.constant 1 : index
    %c0_98 = arith.constant 0 : index
    %c0_99 = arith.constant 0 : index
    %246 = vector.load %arg3[%c1_97, %c0_98, %c0_99] : memref<2x32x32xf32, #tpu.memory_space<vmem>>, vector<1x32x32xf32>
    %247 = vector.shape_cast %246 : vector<1x32x32xf32> to vector<32x32xf32>
    %cst_100 = arith.constant dense<0.000000e+00> : vector<16x32xf32>
    %248 = tpu.matmul %245, %247, %cst_100 {dimension_numbers = #tpu.dot_dimension_numbers<[1], [0], [0], [1], [0, 0, 1, 1], [], []>} : vector<16x32xf32>, vector<32x32xf32>, vector<16x32xf32> -> vector<16x32xf32>
    %c1_101 = arith.constant 1 : index
    %c0_102 = arith.constant 0 : index
    %c0_103 = arith.constant 0 : index
    %249 = vector.load %arg4[%c1_101, %c0_102, %c0_103] : memref<2x1x32xf32, #tpu.memory_space<vmem>>, vector<1x1x32xf32>
    %250 = vector.shape_cast %249 : vector<1x1x32xf32> to vector<1x32xf32>
    %251 = vector.broadcast %250 : vector<1x32xf32> to vector<16x32xf32>
    %252 = arith.addf %248, %251 : vector<16x32xf32>
    %253 = arith.addf %162, %252 : vector<16x32xf32>
    %c1_104 = arith.constant 1 : index
    %c0_105 = arith.constant 0 : index
    %c0_106 = arith.constant 0 : index
    %254 = vector.load %arg5[%c1_104, %c0_105, %c0_106] : memref<2x1x32xf32, #tpu.memory_space<vmem>>, vector<1x1x32xf32>
    %255 = vector.shape_cast %254 : vector<1x1x32xf32> to vector<1x32xf32>
    %c1_107 = arith.constant 1 : index
    %c0_108 = arith.constant 0 : index
    %c0_109 = arith.constant 0 : index
    %256 = vector.load %arg6[%c1_107, %c0_108, %c0_109] : memref<2x1x32xf32, #tpu.memory_space<vmem>>, vector<1x1x32xf32>
    %257 = vector.shape_cast %256 : vector<1x1x32xf32> to vector<1x32xf32>
    %cst_110 = arith.constant dense<0.000000e+00> : vector<16xf32>
    %258 = vector.multi_reduction <add>, %253, %cst_110 [1] : vector<16x32xf32> to vector<16xf32>
    %259 = vector.shape_cast %258 : vector<16xf32> to vector<16x1xf32>
    %cst_111 = arith.constant 3.200000e+01 : f32
    %260 = vector.broadcast %cst_111 : f32 to vector<16x1xf32>
    %261 = arith.divf %259, %260 : vector<16x1xf32>
    %262 = vector.broadcast %261 : vector<16x1xf32> to vector<16x32xf32>
    %263 = arith.subf %253, %262 : vector<16x32xf32>
    %264 = arith.mulf %263, %263 : vector<16x32xf32>
    %cst_112 = arith.constant dense<0.000000e+00> : vector<16xf32>
    %265 = vector.multi_reduction <add>, %264, %cst_112 [1] : vector<16x32xf32> to vector<16xf32>
    %266 = vector.shape_cast %265 : vector<16xf32> to vector<16x1xf32>
    %cst_113 = arith.constant 0.0322580636 : f32
    %267 = vector.broadcast %cst_113 : f32 to vector<16x1xf32>
    %268 = arith.mulf %266, %267 : vector<16x1xf32>
    %269 = math.sqrt %268 : vector<16x1xf32>
    %270 = vector.broadcast %261 : vector<16x1xf32> to vector<16x32xf32>
    %271 = arith.subf %253, %270 : vector<16x32xf32>
    %272 = vector.broadcast %255 : vector<1x32xf32> to vector<16x32xf32>
    %273 = arith.mulf %272, %271 : vector<16x32xf32>
    %cst_114 = arith.constant 9.99999997E-7 : f32
    %274 = vector.broadcast %cst_114 : f32 to vector<16x1xf32>
    %275 = arith.addf %269, %274 : vector<16x1xf32>
    %276 = tpu.reciprocal %275 : vector<16x1xf32> -> vector<16x1xf32>
    %277 = vector.broadcast %276 : vector<16x1xf32> to vector<16x32xf32>
    %278 = arith.mulf %273, %277 : vector<16x32xf32>
    %279 = vector.broadcast %257 : vector<1x32xf32> to vector<16x32xf32>
    %280 = arith.addf %278, %279 : vector<16x32xf32>
    %c1_115 = arith.constant 1 : index
    %c0_116 = arith.constant 0 : index
    %c0_117 = arith.constant 0 : index
    %281 = vector.load %arg7[%c1_115, %c0_116, %c0_117] : memref<2x32x64xf32, #tpu.memory_space<vmem>>, vector<1x32x64xf32>
    %282 = vector.shape_cast %281 : vector<1x32x64xf32> to vector<32x64xf32>
    %cst_118 = arith.constant dense<0.000000e+00> : vector<16x64xf32>
    %283 = tpu.matmul %280, %282, %cst_118 {dimension_numbers = #tpu.dot_dimension_numbers<[1], [0], [0], [1], [0, 0, 1, 1], [], []>} : vector<16x32xf32>, vector<32x64xf32>, vector<16x64xf32> -> vector<16x64xf32>
    %c1_119 = arith.constant 1 : index
    %c0_120 = arith.constant 0 : index
    %c0_121 = arith.constant 0 : index
    %284 = vector.load %arg8[%c1_119, %c0_120, %c0_121] : memref<2x1x64xf32, #tpu.memory_space<vmem>>, vector<1x1x64xf32>
    %285 = vector.shape_cast %284 : vector<1x1x64xf32> to vector<1x64xf32>
    %286 = vector.broadcast %285 : vector<1x64xf32> to vector<16x64xf32>
    %287 = arith.addf %283, %286 : vector<16x64xf32>
    %cst_122 = arith.constant 0.000000e+00 : f32
    %288 = vector.broadcast %cst_122 : f32 to vector<16x64xf32>
    %289 = arith.maximumf %287, %288 : vector<16x64xf32>
    %c1_123 = arith.constant 1 : index
    %c0_124 = arith.constant 0 : index
    %c0_125 = arith.constant 0 : index
    %290 = vector.load %arg9[%c1_123, %c0_124, %c0_125] : memref<2x64x32xf32, #tpu.memory_space<vmem>>, vector<1x64x32xf32>
    %291 = vector.shape_cast %290 : vector<1x64x32xf32> to vector<64x32xf32>
    %cst_126 = arith.constant dense<0.000000e+00> : vector<16x32xf32>
    %292 = tpu.matmul %289, %291, %cst_126 {dimension_numbers = #tpu.dot_dimension_numbers<[1], [0], [0], [1], [0, 0, 1, 1], [], []>} : vector<16x64xf32>, vector<64x32xf32>, vector<16x32xf32> -> vector<16x32xf32>
    %c1_127 = arith.constant 1 : index
    %c0_128 = arith.constant 0 : index
    %c0_129 = arith.constant 0 : index
    %293 = vector.load %arg10[%c1_127, %c0_128, %c0_129] : memref<2x1x32xf32, #tpu.memory_space<vmem>>, vector<1x1x32xf32>
    %294 = vector.shape_cast %293 : vector<1x1x32xf32> to vector<1x32xf32>
    %295 = vector.broadcast %294 : vector<1x32xf32> to vector<16x32xf32>
    %296 = arith.addf %292, %295 : vector<16x32xf32>
    %297 = arith.addf %280, %296 : vector<16x32xf32>
    %c1_130 = arith.constant 1 : index
    %c0_131 = arith.constant 0 : index
    %c0_132 = arith.constant 0 : index
    %298 = vector.load %arg11[%c1_130, %c0_131, %c0_132] : memref<2x1x32xf32, #tpu.memory_space<vmem>>, vector<1x1x32xf32>
    %299 = vector.shape_cast %298 : vector<1x1x32xf32> to vector<1x32xf32>
    %c1_133 = arith.constant 1 : index
    %c0_134 = arith.constant 0 : index
    %c0_135 = arith.constant 0 : index
    %300 = vector.load %arg12[%c1_133, %c0_134, %c0_135] : memref<2x1x32xf32, #tpu.memory_space<vmem>>, vector<1x1x32xf32>
    %301 = vector.shape_cast %300 : vector<1x1x32xf32> to vector<1x32xf32>
    %cst_136 = arith.constant dense<0.000000e+00> : vector<16xf32>
    %302 = vector.multi_reduction <add>, %297, %cst_136 [1] : vector<16x32xf32> to vector<16xf32>
    %303 = vector.shape_cast %302 : vector<16xf32> to vector<16x1xf32>
    %cst_137 = arith.constant 3.200000e+01 : f32
    %304 = vector.broadcast %cst_137 : f32 to vector<16x1xf32>
    %305 = arith.divf %303, %304 : vector<16x1xf32>
    %306 = vector.broadcast %305 : vector<16x1xf32> to vector<16x32xf32>
    %307 = arith.subf %297, %306 : vector<16x32xf32>
    %308 = arith.mulf %307, %307 : vector<16x32xf32>
    %cst_138 = arith.constant dense<0.000000e+00> : vector<16xf32>
    %309 = vector.multi_reduction <add>, %308, %cst_138 [1] : vector<16x32xf32> to vector<16xf32>
    %310 = vector.shape_cast %309 : vector<16xf32> to vector<16x1xf32>
    %cst_139 = arith.constant 0.0322580636 : f32
    %311 = vector.broadcast %cst_139 : f32 to vector<16x1xf32>
    %312 = arith.mulf %310, %311 : vector<16x1xf32>
    %313 = math.sqrt %312 : vector<16x1xf32>
    %314 = vector.broadcast %305 : vector<16x1xf32> to vector<16x32xf32>
    %315 = arith.subf %297, %314 : vector<16x32xf32>
    %316 = vector.broadcast %299 : vector<1x32xf32> to vector<16x32xf32>
    %317 = arith.mulf %316, %315 : vector<16x32xf32>
    %cst_140 = arith.constant 9.99999997E-7 : f32
    %318 = vector.broadcast %cst_140 : f32 to vector<16x1xf32>
    %319 = arith.addf %313, %318 : vector<16x1xf32>
    %320 = tpu.reciprocal %319 : vector<16x1xf32> -> vector<16x1xf32>
    %321 = vector.broadcast %320 : vector<16x1xf32> to vector<16x32xf32>
    %322 = arith.mulf %317, %321 : vector<16x32xf32>
    %323 = vector.broadcast %301 : vector<1x32xf32> to vector<16x32xf32>
    %324 = arith.addf %322, %323 : vector<16x32xf32>
    %c0_141 = arith.constant 0 : index
    %c0_142 = arith.constant 0 : index
    %325 = vector.load %arg13[%c0_141, %c0_142] : memref<1x32xf32, #tpu.memory_space<vmem>>, vector<1x32xf32>
    %c0_143 = arith.constant 0 : index
    %c0_144 = arith.constant 0 : index
    %326 = vector.load %arg14[%c0_143, %c0_144] : memref<1x32xf32, #tpu.memory_space<vmem>>, vector<1x32xf32>
    %cst_145 = arith.constant dense<0.000000e+00> : vector<16xf32>
    %327 = vector.multi_reduction <add>, %324, %cst_145 [1] : vector<16x32xf32> to vector<16xf32>
    %328 = vector.shape_cast %327 : vector<16xf32> to vector<16x1xf32>
    %cst_146 = arith.constant 3.200000e+01 : f32
    %329 = vector.broadcast %cst_146 : f32 to vector<16x1xf32>
    %330 = arith.divf %328, %329 : vector<16x1xf32>
    %331 = vector.broadcast %330 : vector<16x1xf32> to vector<16x32xf32>
    %332 = arith.subf %324, %331 : vector<16x32xf32>
    %333 = arith.mulf %332, %332 : vector<16x32xf32>
    %cst_147 = arith.constant dense<0.000000e+00> : vector<16xf32>
    %334 = vector.multi_reduction <add>, %333, %cst_147 [1] : vector<16x32xf32> to vector<16xf32>
    %335 = vector.shape_cast %334 : vector<16xf32> to vector<16x1xf32>
    %cst_148 = arith.constant 0.0322580636 : f32
    %336 = vector.broadcast %cst_148 : f32 to vector<16x1xf32>
    %337 = arith.mulf %335, %336 : vector<16x1xf32>
    %338 = math.sqrt %337 : vector<16x1xf32>
    %339 = vector.broadcast %330 : vector<16x1xf32> to vector<16x32xf32>
    %340 = arith.subf %324, %339 : vector<16x32xf32>
    %341 = vector.broadcast %325 : vector<1x32xf32> to vector<16x32xf32>
    %342 = arith.mulf %341, %340 : vector<16x32xf32>
    %cst_149 = arith.constant 9.99999997E-7 : f32
    %343 = vector.broadcast %cst_149 : f32 to vector<16x1xf32>
    %344 = arith.addf %338, %343 : vector<16x1xf32>
    %345 = tpu.reciprocal %344 : vector<16x1xf32> -> vector<16x1xf32>
    %346 = vector.broadcast %345 : vector<16x1xf32> to vector<16x32xf32>
    %347 = arith.mulf %342, %346 : vector<16x32xf32>
    %348 = vector.broadcast %326 : vector<1x32xf32> to vector<16x32xf32>
    %349 = arith.addf %347, %348 : vector<16x32xf32>
    %c0_150 = arith.constant 0 : index
    %c0_151 = arith.constant 0 : index
    %350 = vector.load %arg15[%c0_150, %c0_151] : memref<16x32xf32, #tpu.memory_space<vmem>>, vector<16x32xf32>
    tpu.vector_store %arg15[%c0_150, %c0_151], %349 {strides = array<i32>} : memref<16x32xf32, #tpu.memory_space<vmem>>, vector<16x32xf32>,
    return
  }
}

</mosaic_0001>

<bundles_post_ra>
// kernel: tpu_custom_call.1
= control target key start
LH: loop header
LB: loop body
LE: loop exit
PB: predicated region body
PF: predicated region fallthrough
CT: control target
= control target key end

     0   :  { %20 = vsyncpa [#allocation3], 0  ;;  %s5186_s0 = inlined_call_operand.hbm [shape: f32[16,32], index: 0, kind: input, shape index: {}]   ;;  %s5187_s1 = inlined_call_operand.vmem [shape: f32[2,32,96], index: 1, kind: input, shape index: {}]   ;;  %s5188_s2 = inlined_call_operand.vmem [shape: f32[2,1,96], index: 2, kind: input, shape index: {}]   ;;  %s5189_s3 = inlined_call_operand.vmem [shape: f32[2,32,32], index: 3, kind: input, shape index: {}]   ;;  %s5190_s4 = inlined_call_operand.vmem [shape: f32[2,1,32], index: 4, kind: input, shape index: {}]   ;;  %s5191_s5 = inlined_call_operand.vmem [shape: f32[2,1,32], index: 5, kind: input, shape index: {}]   ;;  %s5192_s6 = inlined_call_operand.vmem [shape: f32[2,1,32], index: 6, kind: input, shape index: {}]   ;;  %s5193_s7 = inlined_call_operand.vmem [shape: f32[2,32,64], index: 7, kind: input, shape index: {}]   ;;  %s5194_s8 = inlined_call_operand.vmem [shape: f32[2,1,64], index: 8, kind: input, shape index: {}]   ;;  %s5195_s9 = inlined_call_operand.vmem [shape: f32[2,64,32], index: 9, kind: input, shape index: {}]   ;;  %s5196_s10 = inlined_call_operand.vmem [shape: f32[2,1,32], index: 10, kind: input, shape index: {}]   ;;  %s5197_s11 = inlined_call_operand.vmem [shape: f32[2,1,32], index: 11, kind: input, shape index: {}]   ;;  %s5198_s12 = inlined_call_operand.vmem [shape: f32[2,1,32], index: 12, kind: input, shape index: {}]   ;;  %s5199_s13 = inlined_call_operand.vmem [shape: f32[1,32], index: 13, kind: input, shape index: {}]   ;;  %s5200_s14 = inlined_call_operand.vmem [shape: f32[1,32], index: 14, kind: input, shape index: {}]   ;;  %s5201_s15 = inlined_call_operand.hbm [shape: f32[16,32], index: 15, kind: output, shape index: {}]  }
   0x1   :  { %21 = vsyncpa [#allocation4], 0  ;;  %s4523_s18 = smov [#allocation2]  }
   0x2   :  { %s27_s19 = sshll.u32 %s4523_s18, 4  ;;  %s28_s19 = int_to_ptr.vmem [resolvable:$true] %s27_s19 }
   0x3   :  { %s4487_s20 = scalar_lea.vmem %s28_s19, 256  ;;  %p4492_p1 = scmp.lt.s32.totalorder %s28_s19, %s28_s19 }
   0x4   :  { %p4488_p0 = scmp.ne.s32.totalorder %s28_s19, %s4487_s20  ;;  %p4493_p2 = scmp.lt.s32.totalorder %s4487_s20, %s4487_s20 }
   0x6   :  { %p4494_p3 = por %p4493_p2, %p4492_p1 }
   0x8   :  { %p4495_p4 = pnand %p4494_p3, %p4488_p0 }
   0xa   :  { %4498 = shalt.err (!%p4495_p4)
}
   0xb   :  { %s5202_s21 = smov 128   ;;  %s5205_s22 = smov 8  }
   0xc   :  { %33 = dma.hbm_to_vmem [thread:$0]  %s5186_s0, 256, %s28_s19, [#allocation3], %s5202_s21, %s5202_s21, %s5205_s22  }
   0xd   :  { %4519 = dma.done.wait [#allocation3], 256  }
   0xe   :  { %4520 = vsyncadd [#allocation3], 4294967040  ;;  %vm78_vm0 = vcmask 261120   ;;  %v70_v0 = vld [vmem:[%s5187_s1 + $0x18] sm:$0xff]  ;;  %v69_v1 = vld [vmem:[%s5187_s1 + $0x10] sm:$0xff]  ;;  %v4526_v6 = vmov 0.0  }
   0xf   :  { %4092 = vmatprep.subr.mxu1 %v70_v0  ;;  %v4634_v2 = vld [vmem:[#allocation2] sm:$0xff]  ;;  %v68_v3 = vld [vmem:[%s5187_s1 + $0x8] sm:$0xff]  ;;  %4113 = vmatprep.subr.mxu0 %v4526_v6  ;;  %vm4527_vm1 = vmmov 0   ;;  %s4528_s19 = smov 96   ;;  %vm163_vm2 = vcmask 64512   ;;  %s4529_s20 = smov 64  }
  0x10   :  { %4093 = vmatpush3.msra.mxu1 %v70_v0  ;;  %4100 = vmatprep.mubr.msk.f32.mxu1 %vm78_vm0, %v4634_v2  ;;  %v67_v4 = vld [vmem:[%s5187_s1] sm:$0xff]  ;;  %v4644_v5 = vld [vmem:[#allocation2 + $0x8] sm:$0xff]  ;;  %s4530_s23 = smov 88   ;;  %s4531_s24 = smov 120   ;;  %vm1516_vm3 = vcmask 195584   ;;  %vm1513_vm4 = vcmask 130048  }
  0x11   :  { %4094 = vmatprep.subr.mxu1 %v69_v1  ;;  %4115 = vmatprep.mubr.msk.f32.mxu0 %vm4527_vm1, %v4526_v6  ;;  %v3862_v8 = vld [vmem:[%s5188_s2] ss:$0 sm:$0xff]  ;;  %s4532_s25 = smov 56   ;;  %s4533_s26 = smov 80   ;;  %vm1781_vm9 = vcmask 523264  }
  0x12   :  { %4095 = vmatpush3.msra.mxu1 %v69_v1  ;;  %s4534_s27 = smov 112   ;;  %s4535_s28 = smov 48  }
  0x13   :  { %4096 = vmatprep.subr.mxu1 %v68_v3  ;;  %s5211_s29 = smov 72   ;;  %s5209_s30 = smov 104  }
  0x14   :  { %4097 = vmatpush3.msra.mxu1 %v68_v3  ;;  %s5207_s0 = smov 40   ;;  %s5203_s16 = smov 16  }
  0x15   :  { %4098 = vmatprep.subr.mxu1 %v67_v4  ;;  %s5213_s17 = smov 24  }
  0x16   :  { %4099 = vmatpush3.msra.mxu1 %v67_v4 }
  0x17   :  { %4101 = vmatmul.mubr.msk.f32.vlgmr.msra.gmra.mxu1 %vm78_vm0, %v4644_v5  ;;  %4103 = vmatprep.subr.mxu1 %v4526_v6 }
  0x18   :  { %4105 = vmatprep.mubr.msk.f32.mxu1 %vm4527_vm1, %v4526_v6 }
  0xd7   :  { %v4102_v7 = vpop.f32.mrf.mxu1 }
  0xd8   :  { %v4661_v11 = vadd.f32 %v4102_v7, %v3862_v8 }
  0xd9   :  { %v151_v9 = vpop.f32.mrf.mxu1 }
  0xda   :  { %v4657_v10 = vadd.f32 %v3862_v8, %v151_v9 }
  0xdc   :  { %161 = vrot.lane.b32.xlu0 %v4657_v10, %s4528_s19 }
  0xe0   :  { %239 = vrot.lane.b32.xlu0 %v4661_v11, %s4528_s19 }
 0x14e   :  { %v162_v12 = vpop.permute.xlu0 %161 }
 0x14f   :  { %4104 = vmatpush3.xpose.msk.msra.mxu1 %vm163_vm2, %v162_v12 }
 0x150   :  { %4108 = vmatprep.subr.mxu1 %v4526_v6 }
 0x152   :  { %4106 = vmatmul.mubr.msk.f32.vlgmr.msra.gmra.mxu1 %vm163_vm2, %v4657_v10  ;;  %v240_v13 = vpop.permute.xlu0 %239 }
 0x153   :  { %4109 = vmatpush3.xpose.msk.msra.mxu1 %vm163_vm2, %v240_v13  ;;  %4110 = vmatprep.mubr.msk.f32.mxu1 %vm4527_vm1, %v4526_v6 }
 0x154   :  { %4118 = vmatprep.subr.mxu1 %v4526_v6 }
 0x156   :  { %4111 = vmatmul.mubr.msk.f32.vlgmr.msra.gmra.mxu1 %vm163_vm2, %v4661_v11 }
 0x157   :  { %4120 = vmatprep.mubr.msk.f32.mxu1 %vm4527_vm1, %v4526_v6 }
 0x212   :  { %v234_v14 = vpop.f32.mrf.mxu1 }
 0x213   :  { %v315_v15 = vmul.f32 0.35355338, %v234_v14 }
 0x214   :  { %v4107_v16 = vpop.f32.mrf.mxu1 }
 0x215   :  { %v317_v17 = vsel %vm163_vm2, %v315_v15, -inf }
 0x216   :  { %318 = vmax.xlane.f32.xlu1 %v317_v17  ;;  %v311_v18 = vpop.f32.mrf.mxu1 }
 0x217   :  { %v316_v19 = vmul.f32 0.35355338, %v311_v18 }
 0x218   :  { %v4112_v20 = vpop.f32.mrf.mxu1 }
 0x219   :  { %v320_v21 = vsel %vm163_vm2, %v316_v19, -inf }
 0x21a   :  { %321 = vmax.xlane.f32.xlu1 %v320_v21 }
 0x22b   :  { %339 = vrot.lane.b32.xlu1 %v4657_v10, %s4529_s20 }
 0x22f   :  { %415 = vrot.lane.b32.xlu1 %v4661_v11, %s4529_s20 }
 0x233   :  { %493 = vrot.lane.b32.xlu1 %v4657_v10, %s4530_s23 }
 0x237   :  { %571 = vrot.lane.b32.xlu1 %v4661_v11, %s4530_s23 }
 0x29f   :  { %v319_v22 = vpop.xlane.xlu1 %318 }
 0x2a0   :  { %v323_v23 = vsub.f32 %v315_v15, %v319_v22 }
 0x2a2   :  { %v325_v24 = vmul.f32 1.442695, %v323_v23 }
 0x2a3   :  { %v322_v25 = vpop.xlane.xlu1 %321 }
 0x2a4   :  { %4375 = vpow2.f32 %v325_v24  ;;  %v324_v26 = vsub.f32 %v316_v19, %v322_v25 }
 0x2a6   :  { %v327_v27 = vmul.f32 1.442695, %v324_v26 }
 0x2a7   :  { %v340_v28 = vpop.permute.xlu1 %339 }
 0x2a8   :  { %4377 = vpow2.f32 %v327_v27  ;;  %4114 = vmatpush3.msra.mxu0 %v340_v28 }
 0x2a9   :  { %4123 = vmatprep.subr.mxu0 %v4526_v6 }
 0x2ab   :  { %v416_v29 = vpop.permute.xlu1 %415 }
 0x2ac   :  { %4119 = vmatpush3.msra.mxu1 %v416_v29 }
 0x2ad   :  { %4128 = vmatprep.subr.mxu1 %v4526_v6 }
 0x2af   :  { %v494_v34 = vpop.permute.xlu1 %493 }
 0x2b1   :  { %v4376_v30 = vpop.eup %4375 }
 0x2b2   :  { %v329_v31 = vsel %vm163_vm2, %v4376_v30, 0.0 }
 0x2b3   :  { %330 = vadd.xlane.f32.xlu0 %v329_v31  ;;  %v572_v35 = vpop.permute.xlu1 %571 }
 0x2b5   :  { %v4378_v32 = vpop.eup %4377 }
 0x2b6   :  { %v332_v33 = vsel %vm163_vm2, %v4378_v32, 0.0 }
 0x2b7   :  { %333 = vadd.xlane.f32.xlu1 %v332_v33 }
 0x2c8   :  { %569 = vrot.lane.b32.xlu1 %v4661_v11, %s4531_s24 }
 0x2c9   :  { %491 = vrot.lane.b32.xlu0 %v4657_v10, %s4531_s24 }
 0x33c   :  { %v331_v36 = vpop.xlane.xlu0 %330 }
 0x33d   :  { %4379 = vrcp.f32 %v331_v36 }
 0x340   :  { %v334_v37 = vpop.xlane.xlu1 %333  ;;  %v492_v42 = vpop.permute.xlu0 %491 }
 0x341   :  { %4381 = vrcp.f32 %v334_v37 }
 0x344   :  { %v570_v43 = vpop.permute.xlu1 %569 }
 0x34a   :  { %v4380_v38 = vpop.eup %4379 }
 0x34b   :  { %v337_v39 = vmul.f32 %v4380_v38, %v4376_v30 }
 0x34d   :  { %4116 = vmatmul.mubr.msk.f32.vlgmr.msra.gmra.mxu0 %vm163_vm2, %v337_v39 }
 0x34e   :  { %v4382_v40 = vpop.eup %4381  ;;  %4124 = vmatpush3.xpose.msk.msra.mxu0 %vm163_vm2, %v494_v34  ;;  %4125 = vmatprep.mubr.msk.f32.mxu0 %vm4527_vm1, %v4526_v6 }
 0x34f   :  { %v338_v41 = vmul.f32 %v4382_v40, %v4378_v32  ;;  %4133 = vmatprep.subr.mxu0 %v4526_v6 }
 0x351   :  { %4121 = vmatmul.mubr.msk.f32.vlgmr.msra.gmra.mxu1 %vm163_vm2, %v338_v41  ;;  %4126 = vmatmul.mubr.msk.f32.vlgmr.msra.gmra.mxu0 %vm163_vm2, %v492_v42 }
 0x352   :  { %4129 = vmatpush3.xpose.msk.msra.mxu1 %vm163_vm2, %v572_v35  ;;  %4130 = vmatprep.mubr.msk.f32.mxu1 %vm4527_vm1, %v4526_v6 }
 0x353   :  { %4138 = vmatprep.subr.mxu1 %v4526_v6  ;;  %4135 = vmatprep.mubr.msk.f32.mxu0 %vm4527_vm1, %v4526_v6 }
 0x355   :  { %4131 = vmatmul.mubr.msk.f32.vlgmr.msra.gmra.mxu1 %vm163_vm2, %v570_v43 }
 0x356   :  { %4140 = vmatprep.mubr.msk.f32.mxu1 %vm4527_vm1, %v4526_v6 }
 0x40d   :  { %v4711_v44 = vpop.f32.mrf.mxu0 }
 0x40f   :  { %v4117_v45 = vpop.f32.mrf.mxu0 }
 0x411   :  { %v4713_v46 = vpop.f32.mrf.mxu1  ;;  %v565_v47 = vpop.f32.mrf.mxu0 }
 0x412   :  { %v647_v48 = vmul.f32 0.35355338, %v565_v47 }
 0x413   :  { %v4122_v49 = vpop.f32.mrf.mxu1  ;;  %v4127_v50 = vpop.f32.mrf.mxu0 }
 0x414   :  { %v649_v51 = vsel %vm163_vm2, %v647_v48, -inf }
 0x415   :  { %v643_v52 = vpop.f32.mrf.mxu1  ;;  %650 = vmax.xlane.f32.xlu1 %v649_v51 }
 0x416   :  { %v648_v53 = vmul.f32 0.35355338, %v643_v52 }
 0x417   :  { %v4132_v54 = vpop.f32.mrf.mxu1 }
 0x418   :  { %v652_v55 = vsel %vm163_vm2, %v648_v53, -inf }
 0x419   :  { %653 = vmax.xlane.f32.xlu0 %v652_v55 }
 0x426   :  { %671 = vrot.lane.b32.xlu1 %v4657_v10, %s4532_s25 }
 0x42a   :  { %825 = vrot.lane.b32.xlu1 %v4657_v10, %s4533_s26 }
 0x42e   :  { %903 = vrot.lane.b32.xlu1 %v4661_v11, %s4533_s26 }
 0x42f   :  { %747 = vrot.lane.b32.xlu0 %v4661_v11, %s4532_s25 }
 0x433   :  { %823 = vrot.lane.b32.xlu0 %v4657_v10, %s4534_s27 }
 0x49e   :  { %v651_v56 = vpop.xlane.xlu1 %650 }
 0x49f   :  { %v655_v57 = vsub.f32 %v647_v48, %v651_v56 }
 0x4a1   :  { %v657_v58 = vmul.f32 1.442695, %v655_v57 }
 0x4a2   :  { %v672_v59 = vpop.permute.xlu1 %671  ;;  %v654_v60 = vpop.xlane.xlu0 %653 }
 0x4a3   :  { %4383 = vpow2.f32 %v657_v58  ;;  %v656_v61 = vsub.f32 %v648_v53, %v654_v60  ;;  %4134 = vmatpush3.msra.mxu0 %v672_v59 }
 0x4a4   :  { %4143 = vmatprep.subr.mxu0 %v4526_v6 }
 0x4a5   :  { %v659_v62 = vmul.f32 1.442695, %v656_v61 }
 0x4a6   :  { %v748_v63 = vpop.permute.xlu0 %747  ;;  %v826_v7 = vpop.permute.xlu1 %825 }
 0x4a7   :  { %4385 = vpow2.f32 %v659_v62  ;;  %4139 = vmatpush3.msra.mxu1 %v748_v63 }
 0x4a8   :  { %4148 = vmatprep.subr.mxu1 %v4526_v6 }
 0x4aa   :  { %v904_v8 = vpop.permute.xlu1 %903  ;;  %v824_v17 = vpop.permute.xlu0 %823 }
 0x4b0   :  { %v4384_v0 = vpop.eup %4383 }
 0x4b1   :  { %v661_v1 = vsel %vm163_vm2, %v4384_v0, 0.0 }
 0x4b2   :  { %662 = vadd.xlane.f32.xlu1 %v661_v1 }
 0x4b4   :  { %v4386_v3 = vpop.eup %4385 }
 0x4b5   :  { %v664_v4 = vsel %vm163_vm2, %v4386_v3, 0.0 }
 0x4b6   :  { %665 = vadd.xlane.f32.xlu1 %v664_v4 }
 0x4c7   :  { %901 = vrot.lane.b32.xlu1 %v4661_v11, %s4534_s27 }
 0x53b   :  { %v663_v9 = vpop.xlane.xlu1 %662 }
 0x53c   :  { %4387 = vrcp.f32 %v663_v9 }
 0x53f   :  { %v666_v12 = vpop.xlane.xlu1 %665 }
 0x540   :  { %4389 = vrcp.f32 %v666_v12 }
 0x543   :  { %v902_v18 = vpop.permute.xlu1 %901 }
 0x549   :  { %v4388_v13 = vpop.eup %4387 }
 0x54a   :  { %v669_v14 = vmul.f32 %v4388_v13, %v4384_v0 }
 0x54c   :  { %4136 = vmatmul.mubr.msk.f32.vlgmr.msra.gmra.mxu0 %vm163_vm2, %v669_v14 }
 0x54d   :  { %v4390_v15 = vpop.eup %4389  ;;  %4144 = vmatpush3.xpose.msk.msra.mxu0 %vm163_vm2, %v826_v7  ;;  %4145 = vmatprep.mubr.msk.f32.mxu0 %vm4527_vm1, %v4526_v6 }
 0x54e   :  { %v670_v16 = vmul.f32 %v4390_v15, %v4386_v3  ;;  %4153 = vmatprep.subr.mxu0 %v4526_v6 }
 0x550   :  { %4141 = vmatmul.mubr.msk.f32.vlgmr.msra.gmra.mxu1 %vm163_vm2, %v670_v16  ;;  %4146 = vmatmul.mubr.msk.f32.vlgmr.msra.gmra.mxu0 %vm163_vm2, %v824_v17 }
 0x551   :  { %4149 = vmatpush3.xpose.msk.msra.mxu1 %vm163_vm2, %v904_v8  ;;  %4150 = vmatprep.mubr.msk.f32.mxu1 %vm4527_vm1, %v4526_v6 }
 0x552   :  { %4158 = vmatprep.subr.mxu1 %v4526_v6  ;;  %4155 = vmatprep.mubr.msk.f32.mxu0 %vm4527_vm1, %v4526_v6 }
 0x554   :  { %4151 = vmatmul.mubr.msk.f32.vlgmr.msra.gmra.mxu1 %vm163_vm2, %v902_v18 }
 0x555   :  { %4160 = vmatprep.mubr.msk.f32.mxu1 %vm4527_vm1, %v4526_v6 }
 0x60c   :  { %v4749_v19 = vpop.f32.mrf.mxu0 }
 0x60e   :  { %v4137_v20 = vpop.f32.mrf.mxu0 }
 0x610   :  { %v4751_v21 = vpop.f32.mrf.mxu1  ;;  %v897_v22 = vpop.f32.mrf.mxu0 }
 0x611   :  { %v979_v23 = vmul.f32 0.35355338, %v897_v22 }
 0x612   :  { %v4142_v24 = vpop.f32.mrf.mxu1  ;;  %v4147_v25 = vpop.f32.mrf.mxu0 }
 0x613   :  { %v981_v26 = vsel %vm163_vm2, %v979_v23, -inf  ;;  %v1521_v25 = vld [vmem:[%s5189_s3 + $0x10] sm:$0xff] }
 0x614   :  { %v975_v27 = vpop.f32.mrf.mxu1  ;;  %982 = vmax.xlane.f32.xlu0 %v981_v26  ;;  %v1520_v26 = vld [vmem:[%s5189_s3 + $0x8] sm:$0xff] }
 0x615   :  { %v980_v28 = vmul.f32 0.35355338, %v975_v27  ;;  %v1519_v27 = vld [vmem:[%s5189_s3] sm:$0xff] }
 0x616   :  { %v4152_v29 = vpop.f32.mrf.mxu1 }
 0x617   :  { %v984_v30 = vsel %vm163_vm2, %v980_v28, -inf }
 0x618   :  { %985 = vmax.xlane.f32.xlu1 %v984_v30 }
 0x629   :  { %1003 = vrot.lane.b32.xlu1 %v4657_v10, %s4535_s28 }
 0x62a   :  { %1079 = vrot.lane.b32.xlu0 %v4661_v11, %s4535_s28 }
 0x62d   :  { %1157 = vrot.lane.b32.xlu1 %v4657_v10, %s5211_s29 }
 0x631   :  { %1235 = vrot.lane.b32.xlu1 %v4661_v11, %s5211_s29  ;;  %s5220_s29 = smov 24  }
 0x635   :  { %1233 = vrot.lane.b32.xlu1 %v4661_v11, %s5209_s30 }
 0x69d   :  { %v983_v31 = vpop.xlane.xlu0 %982 }
 0x69e   :  { %v987_v32 = vsub.f32 %v979_v23, %v983_v31 }
 0x6a0   :  { %v989_v33 = vmul.f32 1.442695, %v987_v32 }
 0x6a1   :  { %v986_v34 = vpop.xlane.xlu1 %985  ;;  %v1080_v35 = vpop.permute.xlu0 %1079 }
 0x6a2   :  { %4391 = vpow2.f32 %v989_v33  ;;  %v988_v36 = vsub.f32 %v980_v28, %v986_v34  ;;  %4159 = vmatpush3.msra.mxu1 %v1080_v35 }
 0x6a3   :  { %4168 = vmatprep.subr.mxu1 %v4526_v6 }
 0x6a4   :  { %v991_v37 = vmul.f32 1.442695, %v988_v36 }
 0x6a5   :  { %v1004_v38 = vpop.permute.xlu1 %1003 }
 0x6a6   :  { %4393 = vpow2.f32 %v991_v37  ;;  %4154 = vmatpush3.msra.mxu0 %v1004_v38 }
 0x6a7   :  { %4163 = vmatprep.subr.mxu0 %v4526_v6 }
 0x6a9   :  { %v1158_v47 = vpop.permute.xlu1 %1157 }
 0x6ad   :  { %v1236_v51 = vpop.permute.xlu1 %1235 }
 0x6af   :  { %v4392_v39 = vpop.eup %4391 }
 0x6b0   :  { %v993_v40 = vsel %vm163_vm2, %v4392_v39, 0.0 }
 0x6b1   :  { %994 = vadd.xlane.f32.xlu0 %v993_v40  ;;  %v1234_v54 = vpop.permute.xlu1 %1233 }
 0x6b3   :  { %v4394_v41 = vpop.eup %4393 }
 0x6b4   :  { %v996_v42 = vsel %vm163_vm2, %v4394_v41, 0.0 }
 0x6b5   :  { %997 = vadd.xlane.f32.xlu0 %v996_v42 }
 0x6cb   :  { %1155 = vrot.lane.b32.xlu0 %v4657_v10, %s5209_s30 }
 0x73a   :  { %v995_v43 = vpop.xlane.xlu0 %994 }
 0x73b   :  { %4395 = vrcp.f32 %v995_v43 }
 0x73e   :  { %v998_v45 = vpop.xlane.xlu0 %997 }
 0x73f   :  { %4397 = vrcp.f32 %v998_v45 }
 0x742   :  { %v1156_v53 = vpop.permute.xlu0 %1155 }
 0x748   :  { %v4396_v48 = vpop.eup %4395 }
 0x749   :  { %v1001_v49 = vmul.f32 %v4396_v48, %v4392_v39 }
 0x74b   :  { %4156 = vmatmul.mubr.msk.f32.vlgmr.msra.gmra.mxu0 %vm163_vm2, %v1001_v49 }
 0x74c   :  { %v4398_v50 = vpop.eup %4397  ;;  %4164 = vmatpush3.xpose.msk.msra.mxu0 %vm163_vm2, %v1158_v47  ;;  %4165 = vmatprep.mubr.msk.f32.mxu0 %vm4527_vm1, %v4526_v6 }
 0x74d   :  { %v1002_v52 = vmul.f32 %v4398_v50, %v4394_v41  ;;  %4173 = vmatprep.subr.mxu0 %v4526_v6 }
 0x74f   :  { %4161 = vmatmul.mubr.msk.f32.vlgmr.msra.gmra.mxu1 %vm163_vm2, %v1002_v52  ;;  %4166 = vmatmul.mubr.msk.f32.vlgmr.msra.gmra.mxu0 %vm163_vm2, %v1156_v53 }
 0x750   :  { %4169 = vmatpush3.xpose.msk.msra.mxu1 %vm163_vm2, %v1236_v51  ;;  %4170 = vmatprep.mubr.msk.f32.mxu1 %vm4527_vm1, %v4526_v6 }
 0x751   :  { %4178 = vmatprep.subr.mxu1 %v4526_v6  ;;  %4175 = vmatprep.mubr.msk.f32.mxu0 %vm4527_vm1, %v4526_v6 }
 0x753   :  { %4171 = vmatmul.mubr.msk.f32.vlgmr.msra.gmra.mxu1 %vm163_vm2, %v1234_v54 }
 0x754   :  { %4180 = vmatprep.mubr.msk.f32.mxu1 %vm4527_vm1, %v4526_v6 }
 0x80b   :  { %v1075_v55 = vpop.f32.mrf.mxu0 }
 0x80d   :  { %v4157_v56 = vpop.f32.mrf.mxu0 }
 0x80f   :  { %v1151_v57 = vpop.f32.mrf.mxu1  ;;  %v1229_v58 = vpop.f32.mrf.mxu0 }
 0x810   :  { %v1311_v59 = vmul.f32 0.35355338, %v1229_v58 }
 0x811   :  { %v4162_v60 = vpop.f32.mrf.mxu1  ;;  %v4167_v61 = vpop.f32.mrf.mxu0 }
 0x812   :  { %v1313_v62 = vsel %vm163_vm2, %v1311_v59, -inf }
 0x813   :  { %v1307_v63 = vpop.f32.mrf.mxu1  ;;  %1314 = vmax.xlane.f32.xlu0 %v1313_v62  ;;  %v1674_v62 = vld [vmem:[%s5193_s7 + $0x10] sm:$0xff] }
 0x814   :  { %v1312_v0 = vmul.f32 0.35355338, %v1307_v63  ;;  %v1673_v63 = vld [vmem:[%s5193_s7 + $0x8] sm:$0xff] }
 0x815   :  { %v4172_v1 = vpop.f32.mrf.mxu1 }
 0x816   :  { %v1316_v3 = vsel %vm163_vm2, %v1312_v0, -inf  ;;  %v1773_v1 = vld [vmem:[%s5195_s9 + $0x38] sm:$0xff] }
 0x817   :  { %1317 = vmax.xlane.f32.xlu1 %v1316_v3  ;;  %v1772_v3 = vld [vmem:[%s5195_s9 + $0x30] sm:$0xff] }
 0x828   :  { %1335 = vrot.lane.b32.xlu1 %v4657_v10, %s5207_s0 }
 0x82c   :  { %1489 = vrot.lane.b32.xlu1 %v4749_v19, %s5205_s22 }
 0x830   :  { %1491 = vrot.lane.b32.xlu1 %v4751_v21, %s5205_s22 }
 0x834   :  { %1499 = vrot.lane.b32.xlu1 %v1151_v57, %s5203_s16 }
 0x89c   :  { %v1315_v4 = vpop.xlane.xlu0 %1314 }
 0x89d   :  { %v1319_v7 = vsub.f32 %v1311_v59, %v1315_v4  ;;  %v1771_v4 = vld [vmem:[%s5195_s9 + $0x28] sm:$0xff] }
 0x89f   :  { %v1321_v8 = vmul.f32 1.442695, %v1319_v7  ;;  %v1770_v7 = vld [vmem:[%s5195_s9 + $0x20] sm:$0xff] }
 0x8a0   :  { %v1318_v9 = vpop.xlane.xlu1 %1317 }
 0x8a1   :  { %4399 = vpow2.f32 %v1321_v8  ;;  %v1320_v12 = vsub.f32 %v1312_v0, %v1318_v9  ;;  %v1672_v0 = vld [vmem:[%s5193_s7] sm:$0xff] }
 0x8a3   :  { %v1323_v13 = vmul.f32 1.442695, %v1320_v12 }
 0x8a4   :  { %v1336_v14 = vpop.permute.xlu1 %1335 }
 0x8a5   :  { %4401 = vpow2.f32 %v1323_v13  ;;  %4174 = vmatpush3.msra.mxu0 %v1336_v14 }
 0x8a8   :  { %v1490_v32 = vpop.permute.xlu1 %1489 }
 0x8a9   :  { %v1511_v35 = vsel %vm163_vm2, %v4711_v44, %v1490_v32  ;;  %v3889_v44 = vld [vmem:[%s5190_s4] ss:$0 sm:$0xff] }
 0x8ac   :  { %v1492_v33 = vpop.permute.xlu1 %1491 }
 0x8ad   :  { %v1512_v40 = vsel %vm163_vm2, %v4713_v46, %v1492_v33 }
 0x8ae   :  { %v4400_v10 = vpop.eup %4399 }
 0x8af   :  { %v1325_v15 = vsel %vm163_vm2, %v4400_v10, 0.0 }
 0x8b0   :  { %1326 = vadd.xlane.f32.xlu0 %v1325_v15  ;;  %v1500_v36 = vpop.permute.xlu1 %1499 }
 0x8b1   :  { %v1515_v41 = vsel %vm1513_vm4, %v1512_v40, %v1500_v36  ;;  %v1767_v36 = vld [vmem:[%s5195_s9 + $0x8] sm:$0xff] }
 0x8b2   :  { %v4402_v16 = vpop.eup %4401 }
 0x8b3   :  { %v1328_v17 = vsel %vm163_vm2, %v4402_v16, 0.0 }
 0x8b4   :  { %1329 = vadd.xlane.f32.xlu0 %v1328_v17 }
 0x8ca   :  { %1411 = vrot.lane.b32.xlu0 %v4661_v11, %s5207_s0  ;;  %v1522_v11 = vld [vmem:[%s5189_s3 + $0x18] sm:$0xff] }
 0x8cb   :  { %4183 = vmatprep.subr.mxu0 %v1522_v11 }
 0x8ce   :  { %1497 = vrot.lane.b32.xlu0 %v1075_v55, %s5203_s16 }
 0x939   :  { %v1327_v18 = vpop.xlane.xlu0 %1326 }
 0x93a   :  { %4403 = vrcp.f32 %v1327_v18 }
 0x93d   :  { %v1330_v19 = vpop.xlane.xlu0 %1329 }
 0x93e   :  { %4405 = vrcp.f32 %v1330_v19 }
 0x941   :  { %v1412_v20 = vpop.permute.xlu0 %1411 }
 0x942   :  { %4179 = vmatpush3.msra.mxu1 %v1412_v20 }
 0x945   :  { %v1498_v34 = vpop.permute.xlu0 %1497 }
 0x946   :  { %v1514_v37 = vsel %vm1513_vm4, %v1511_v35, %v1498_v34  ;;  %v1769_v34 = vld [vmem:[%s5195_s9 + $0x18] sm:$0xff]  ;;  %v1768_v35 = vld [vmem:[%s5195_s9 + $0x10] sm:$0xff] }
 0x947   :  { %v4404_v21 = vpop.eup %4403 }
 0x948   :  { %v1333_v22 = vmul.f32 %v4404_v21, %v4400_v10 }
 0x94a   :  { %4176 = vmatmul.mubr.msk.f32.vlgmr.msra.gmra.mxu0 %vm163_vm2, %v1333_v22 }
 0x94b   :  { %v4406_v23 = vpop.eup %4405  ;;  %4184 = vmatpush3.msra.mxu0 %v1522_v11  ;;  %v3892_v11 = vld [vmem:[%s5191_s5] ss:$0 sm:$0xff] }
 0x94c   :  { %v1334_v24 = vmul.f32 %v4406_v23, %v4402_v16  ;;  %4185 = vmatprep.subr.mxu0 %v1521_v25 }
 0x94d   :  { %4186 = vmatpush3.msra.mxu0 %v1521_v25 }
 0x94e   :  { %4181 = vmatmul.mubr.msk.f32.vlgmr.msra.gmra.mxu1 %vm163_vm2, %v1334_v24  ;;  %4187 = vmatprep.subr.mxu0 %v1520_v26 }
 0x94f   :  { %4188 = vmatpush3.msra.mxu0 %v1520_v26 }
 0x950   :  { %4189 = vmatprep.subr.mxu0 %v1519_v27 }
 0x951   :  { %4190 = vmatpush3.msra.mxu0 %v1519_v27  ;;  %v3893_v27 = vld [vmem:[%s5192_s6] ss:$0 sm:$0xff] }
 0x952   :  { %4205 = vmatprep.subr.mxu0 %v1773_v1 }
 0xa0a   :  { %v1407_v28 = vpop.f32.mrf.mxu0 }
 0xa0b   :  { %1505 = vrot.lane.b32.xlu0 %v1407_v28, %s5213_s17 }
 0xa0c   :  { %v4177_v29 = vpop.f32.mrf.mxu0 }
 0xa0e   :  { %v1483_v30 = vpop.f32.mrf.mxu1 }
 0xa0f   :  { %1507 = vrot.lane.b32.xlu1 %v1483_v30, %s5213_s17  ;;  %s4541_s17 = smov [#allocation5]  }
 0xa10   :  { %v4182_v31 = vpop.f32.mrf.mxu1  ;;  %s3850_s22 = sshll.u32 %s4541_s17, 4  ;;  %s3851_s22 = int_to_ptr.vmem [resolvable:$true] %s3850_s22 }
 0xa11   :  { %p4504_p6 = scmp.lt.s32.totalorder %s3851_s22, %s3851_s22 }
 0xa7d   :  { %v1506_v38 = vpop.permute.xlu0 %1505 }
 0xa7e   :  { %v1517_v39 = vsel %vm1516_vm3, %v1514_v37, %v1506_v38  ;;  %v1766_v37 = vld [vmem:[%s5195_s9] sm:$0xff] }
 0xa7f   :  { %4191 = vmatprep.mubr.msk.f32.mxu0 %vm78_vm0, %v1517_v39  ;;  %v3894_v38 = vld [vmem:[%s5194_s8] ss:$0 sm:$0xff] }
 0xa81   :  { %v1508_v42 = vpop.permute.xlu1 %1507 }
 0xa82   :  { %v1518_v43 = vsel %vm1516_vm3, %v1515_v41, %v1508_v42 }
 0xa83   :  { %4192 = vmatmul.mubr.msk.f32.vlgmr.msra.gmra.mxu0 %vm78_vm0, %v1518_v43 }
 0xa84   :  { %4206 = vmatpush3.msra.mxu0 %v1773_v1  ;;  %v3902_v1 = vld [vmem:[%s5187_s1 + $0x20] sm:$0xff] }
 0xa85   :  { %4207 = vmatprep.subr.mxu0 %v1772_v3 }
 0xa86   :  { %4208 = vmatpush3.msra.mxu0 %v1772_v3 }
 0xa87   :  { %4209 = vmatprep.subr.mxu0 %v1771_v4 }
 0xa88   :  { %4210 = vmatpush3.msra.mxu0 %v1771_v4 }
 0xa89   :  { %4211 = vmatprep.subr.mxu0 %v1770_v7 }
 0xa8a   :  { %4212 = vmatpush3.msra.mxu0 %v1770_v7 }
 0xa8b   :  { %4213 = vmatprep.subr.mxu0 %v1769_v34 }
 0xa8c   :  { %4214 = vmatpush3.msra.mxu0 %v1769_v34 }
 0xa8d   :  { %4215 = vmatprep.subr.mxu0 %v1768_v35 }
 0xa8e   :  { %4216 = vmatpush3.msra.mxu0 %v1768_v35 }
 0xa8f   :  { %4217 = vmatprep.subr.mxu0 %v1767_v36 }
 0xa90   :  { %4218 = vmatpush3.msra.mxu0 %v1767_v36 }
 0xa91   :  { %4219 = vmatprep.subr.mxu0 %v1766_v37 }
 0xa92   :  { %4220 = vmatpush3.msra.mxu0 %v1766_v37 }
 0xa93   :  { %4245 = vmatprep.subr.mxu0 %v4526_v6 }
 0xb43   :  { %v4193_v45 = vpop.f32.mrf.mxu0 }
 0xb44   :  { %v1608_v47 = vadd.f32 %v4193_v45, %v3889_v44  ;;  %v3897_v45 = vld [vmem:[%s5196_s10] ss:$0 sm:$0xff] }
 0xb45   :  { %v1602_v48 = vpop.f32.mrf.mxu0 }
 0xb46   :  { %v1603_v49 = vadd.f32 %v3889_v44, %v1602_v48  ;;  %v1612_v50 = vadd.f32 %v1608_v47, %v4644_v5 }
 0xb48   :  { %v1618_v51 = vsel %vm78_vm0, %v1612_v50, 0.0  ;;  %v1611_v46 = vadd.f32 %v1603_v49, %v4634_v2  ;;  %v1675_v2 = vld [vmem:[%s5193_s7 + $0x18] sm:$0xff] }
 0xb49   :  { %1619 = vadd.xlane.f32.xlu1 %v1618_v51  ;;  %4194 = vmatprep.subr.mxu1 %v1675_v2 }
 0xb4a   :  { %v1615_v52 = vsel %vm78_vm0, %v1611_v46, 0.0  ;;  %4195 = vmatpush3.msra.mxu1 %v1675_v2 }
 0xb4b   :  { %1616 = vadd.xlane.f32.xlu0 %v1615_v52  ;;  %4196 = vmatprep.subr.mxu1 %v1674_v62 }
 0xb4c   :  { %4197 = vmatpush3.msra.mxu1 %v1674_v62  ;;  %v3905_v62 = vld [vmem:[%s5187_s1 + $0x38] sm:$0xff] }
 0xb4d   :  { %4198 = vmatprep.subr.mxu1 %v1673_v63 }
 0xb4e   :  { %4199 = vmatpush3.msra.mxu1 %v1673_v63  ;;  %v3904_v63 = vld [vmem:[%s5187_s1 + $0x30] sm:$0xff] }
 0xb4f   :  { %4200 = vmatprep.subr.mxu1 %v1672_v0 }
 0xb50   :  { %4201 = vmatpush3.msra.mxu1 %v1672_v0  ;;  %v3903_v0 = vld [vmem:[%s5187_s1 + $0x28] sm:$0xff] }
 0xb51   :  { %4224 = vmatprep.subr.mxu1 %v3905_v62 }
 0xbd2   :  { %v1620_v53 = vpop.xlane.xlu1 %1619 }
 0xbd3   :  { %v1623_v54 = vmul.f32 0.03125, %v1620_v53 }
 0xbd4   :  { %v1617_v55 = vpop.xlane.xlu0 %1616 }
 0xbd5   :  { %v1622_v56 = vmul.f32 0.03125, %v1617_v55  ;;  %v1625_v57 = vsub.f32 %v1612_v50, %v1623_v54 }
 0xbd7   :  { %v1624_v58 = vsub.f32 %v1611_v46, %v1622_v56  ;;  %v1627_v61 = vmul.f32 %v1625_v57, %v1625_v57  ;;  %v1657_v29 = vmul.f32 %v3892_v11, %v1625_v57 }
 0xbd9   :  { %v1626_v59 = vmul.f32 %v1624_v58, %v1624_v58  ;;  %v1631_v5 = vsel %vm78_vm0, %v1627_v61, 0.0  ;;  %v1656_v25 = vmul.f32 %v3892_v11, %v1624_v58 }
 0xbdb   :  { %v1628_v60 = vsel %vm78_vm0, %v1626_v59, 0.0 }
 0xbdc   :  { %1629 = vadd.xlane.f32.xlu0 %v1628_v60 }
 0xbe0   :  { %1632 = vadd.xlane.f32.xlu0 %v1631_v5 }
 0xc65   :  { %v1630_v8 = vpop.xlane.xlu0 %1629 }
 0xc66   :  { %v1634_v9 = vmul.f32 0.032258064, %v1630_v8 }
 0xc68   :  { %4407 = vrsqrt.f32 %v1634_v9  ;;  %vm1638_vm5 = vcmp.eq.f32.partialorder %v1634_v9, inf  ;;  %v1641_v15 = vand.u32 2147483648, %v1634_v9  ;;  %vm1640_vm6 = vcmp.eq.f32.partialorder %v1634_v9, 0.0 }
 0xc69   :  { %v1633_v12 = vpop.xlane.xlu0 %1632 }
 0xc6a   :  { %v1635_v13 = vmul.f32 0.032258064, %v1633_v12 }
 0xc6c   :  { %4409 = vrsqrt.f32 %v1635_v13  ;;  %vm1645_vm7 = vcmp.eq.f32.partialorder %v1635_v13, inf  ;;  %v1648_v21 = vand.u32 2147483648, %v1635_v13  ;;  %vm1647_vm8 = vcmp.eq.f32.partialorder %v1635_v13, 0.0 }
 0xc75   :  { %v4408_v14 = vpop.eup %4407 }
 0xc76   :  { %v1637_v10 = vmul.f32 %v4408_v14, %v1634_v9 }
 0xc78   :  { %v1639_v16 = vsel %vm1638_vm5, %v1634_v9, %v1637_v10 }
 0xc79   :  { %v4410_v17 = vpop.eup %4409  ;;  %v1642_v18 = vsel %vm1640_vm6, %v1641_v15, %v1639_v16 }
 0xc7a   :  { %v1658_v19 = vadd.f32 1e-06, %v1642_v18  ;;  %v1644_v20 = vmul.f32 %v4410_v17, %v1635_v13 }
 0xc7c   :  { %4411 = vrcp.f32 %v1658_v19  ;;  %v1646_v22 = vsel %vm1645_vm7, %v1635_v13, %v1644_v20 }
 0xc7d   :  { %v1649_v23 = vsel %vm1647_vm8, %v1648_v21, %v1646_v22  ;;  %v3900_v22 = vld [vmem:[%s5197_s11] ss:$0 sm:$0xff] }
 0xc7e   :  { %v1659_v24 = vadd.f32 1e-06, %v1649_v23 }
 0xc80   :  { %4413 = vrcp.f32 %v1659_v24 }
 0xc89   :  { %v4412_v26 = vpop.eup %4411 }
 0xc8a   :  { %v1662_v28 = vmul.f32 %v4412_v26, %v1656_v25 }
 0xc8c   :  { %v1670_v30 = vadd.f32 %v3893_v27, %v1662_v28 }
 0xc8d   :  { %v4414_v31 = vpop.eup %4413 }
 0xc8e   :  { %v1663_v32 = vmul.f32 %v4414_v31, %v1657_v29  ;;  %4202 = vmatprep.mubr.msk.f32.mxu1 %vm78_vm0, %v1670_v30  ;;  %v3907_v31 = vld [vmem:[%s5188_s2 + $0x1] ss:$0 sm:$0xff]  ;;  %s5215_s2 = smov 72  }
 0xc90   :  { %v1671_v33 = vadd.f32 %v3893_v27, %v1663_v32  ;;  %v3901_v27 = vld [vmem:[%s5198_s12] ss:$0 sm:$0xff] }
 0xc92   :  { %4203 = vmatmul.mubr.msk.f32.vlgmr.msra.gmra.mxu1 %vm78_vm0, %v1671_v33 }
 0xc93   :  { %4225 = vmatpush3.msra.mxu1 %v3905_v62 }
 0xc94   :  { %4226 = vmatprep.subr.mxu1 %v3904_v63 }
 0xc95   :  { %4227 = vmatpush3.msra.mxu1 %v3904_v63 }
 0xc96   :  { %4228 = vmatprep.subr.mxu1 %v3903_v0 }
 0xc97   :  { %4229 = vmatpush3.msra.mxu1 %v3903_v0 }
 0xc98   :  { %4230 = vmatprep.subr.mxu1 %v3902_v1 }
 0xc99   :  { %4231 = vmatpush3.msra.mxu1 %v3902_v1 }
 0xc9a   :  { %4235 = vmatprep.subr.mxu1 %v4526_v6 }
 0xd52   :  { %v4204_v39 = vpop.f32.mrf.mxu1 }
 0xd53   :  { %v1761_v40 = vadd.f32 %v4204_v39, %v3894_v38 }
 0xd54   :  { %v1755_v41 = vpop.f32.mrf.mxu1 }
 0xd55   :  { %v1756_v42 = vadd.f32 %v3894_v38, %v1755_v41  ;;  %v1765_v44 = vmax.f32 %v1761_v40, 0.0 }
 0xd57   :  { %v1764_v43 = vmax.f32 %v1756_v42, 0.0 }
 0xd59   :  { %4221 = vmatprep.mubr.msk.f32.mxu0 %vm1781_vm9, %v1764_v43 }
 0xd5a   :  { %4222 = vmatmul.mubr.msk.f32.vlgmr.msra.gmra.mxu0 %vm1781_vm9, %v1765_v44 }
 0xd5b   :  { %4247 = vmatprep.mubr.msk.f32.mxu0 %vm4527_vm1, %v4526_v6 }
 0xe1a   :  { %v4223_v47 = vpop.f32.mrf.mxu0 }
 0xe1b   :  { %v1860_v48 = vadd.f32 %v4223_v47, %v3897_v45 }
 0xe1c   :  { %v1854_v49 = vpop.f32.mrf.mxu0 }
 0xe1d   :  { %v1855_v50 = vadd.f32 %v3897_v45, %v1854_v49  ;;  %v1864_v51 = vadd.f32 %v1860_v48, %v1671_v33 }
 0xe1f   :  { %v1870_v46 = vsel %vm78_vm0, %v1864_v51, 0.0  ;;  %v1863_v52 = vadd.f32 %v1855_v50, %v1670_v30 }
 0xe20   :  { %1871 = vadd.xlane.f32.xlu0 %v1870_v46 }
 0xe21   :  { %v1867_v53 = vsel %vm78_vm0, %v1863_v52, 0.0 }
 0xe22   :  { %1868 = vadd.xlane.f32.xlu1 %v1867_v53 }
 0xea9   :  { %v1872_v54 = vpop.xlane.xlu0 %1871 }
 0xeaa   :  { %v1874_v55 = vmul.f32 0.03125, %v1872_v54 }
 0xeab   :  { %v1869_v56 = vpop.xlane.xlu1 %1868 }
 0xeac   :  { %v1876_v57 = vsub.f32 %v1864_v51, %v1874_v55  ;;  %v1873_v58 = vmul.f32 0.03125, %v1869_v56 }
 0xeae   :  { %v1875_v59 = vsub.f32 %v1863_v52, %v1873_v58  ;;  %v1878_v60 = vmul.f32 %v1876_v57, %v1876_v57  ;;  %v1908_v24 = vmul.f32 %v3900_v22, %v1876_v57 }
 0xeb0   :  { %v1882_v61 = vsel %vm78_vm0, %v1878_v60, 0.0  ;;  %v1877_v5 = vmul.f32 %v1875_v59, %v1875_v59  ;;  %v1907_v11 = vmul.f32 %v3900_v22, %v1875_v59 }
 0xeb1   :  { %1883 = vadd.xlane.f32.xlu0 %v1882_v61 }
 0xeb2   :  { %v1879_v2 = vsel %vm78_vm0, %v1877_v5, 0.0 }
 0xeb3   :  { %1880 = vadd.xlane.f32.xlu1 %v1879_v2 }
 0xf3a   :  { %v1884_v3 = vpop.xlane.xlu0 %1883 }
 0xf3b   :  { %v1886_v4 = vmul.f32 0.032258064, %v1884_v3 }
 0xf3c   :  { %v1881_v7 = vpop.xlane.xlu1 %1880 }
 0xf3d   :  { %4415 = vrsqrt.f32 %v1886_v4  ;;  %v1885_v8 = vmul.f32 0.032258064, %v1881_v7  ;;  %vm1896_vm10 = vcmp.eq.f32.partialorder %v1886_v4, inf  ;;  %v1899_v13 = vand.u32 2147483648, %v1886_v4 }
 0xf3e   :  { %vm1898_vm11 = vcmp.eq.f32.partialorder %v1886_v4, 0.0 }
 0xf3f   :  { %4417 = vrsqrt.f32 %v1885_v8  ;;  %vm1889_vm12 = vcmp.eq.f32.partialorder %v1885_v8, inf  ;;  %v1892_v18 = vand.u32 2147483648, %v1885_v8  ;;  %vm1891_vm13 = vcmp.eq.f32.partialorder %v1885_v8, 0.0 }
 0xf4a   :  { %v4416_v9 = vpop.eup %4415 }
 0xf4b   :  { %v1895_v12 = vmul.f32 %v4416_v9, %v1886_v4 }
 0xf4c   :  { %v4418_v14 = vpop.eup %4417 }
 0xf4d   :  { %v1897_v10 = vsel %vm1896_vm10, %v1886_v4, %v1895_v12  ;;  %v1888_v16 = vmul.f32 %v4418_v14, %v1885_v8 }
 0xf4e   :  { %v1900_v15 = vsel %vm1898_vm11, %v1899_v13, %v1897_v10 }
 0xf4f   :  { %v1910_v17 = vadd.f32 1e-06, %v1900_v15  ;;  %v1890_v19 = vsel %vm1889_vm12, %v1885_v8, %v1888_v16 }
 0xf50   :  { %v1893_v20 = vsel %vm1891_vm13, %v1892_v18, %v1890_v19 }
 0xf51   :  { %4419 = vrcp.f32 %v1910_v17  ;;  %v1909_v21 = vadd.f32 1e-06, %v1893_v20 }
 0xf53   :  { %4421 = vrcp.f32 %v1909_v21 }
 0xf5e   :  { %v4420_v23 = vpop.eup %4419 }
 0xf5f   :  { %v1914_v26 = vmul.f32 %v4420_v23, %v1908_v24 }
 0xf60   :  { %v4422_v25 = vpop.eup %4421 }
 0xf61   :  { %v1913_v28 = vmul.f32 %v4422_v25, %v1907_v11  ;;  %v4916_v30 = vadd.f32 %v3901_v27, %v1914_v26 }
 0xf63   :  { %v4914_v29 = vadd.f32 %v3901_v27, %v1913_v28 }
 0xf65   :  { %4232 = vmatprep.mubr.msk.f32.mxu1 %vm78_vm0, %v4914_v29 }
 0xf66   :  { %4233 = vmatmul.mubr.msk.f32.vlgmr.msra.gmra.mxu1 %vm78_vm0, %v4916_v30 }
 0xf67   :  { %4237 = vmatprep.mubr.msk.f32.mxu1 %vm4527_vm1, %v4526_v6 }
0x1026   :  { %v4234_v32 = vpop.f32.mrf.mxu1 }
0x1027   :  { %v4927_v33 = vadd.f32 %v4234_v32, %v3907_v31 }
0x1028   :  { %v2008_v34 = vpop.f32.mrf.mxu1 }
0x1029   :  { %v4929_v35 = vadd.f32 %v3907_v31, %v2008_v34  ;;  %2095 = vrot.lane.b32.xlu0 %v4927_v33, %s4528_s19 }
0x102b   :  { %2018 = vrot.lane.b32.xlu1 %v4929_v35, %s4528_s19  ;;  %s5216_s19 = smov 104  }
0x109b   :  { %v2096_v37 = vpop.permute.xlu0 %2095 }
0x109d   :  { %v2019_v36 = vpop.permute.xlu1 %2018 }
0x109e   :  { %4236 = vmatpush3.xpose.msk.msra.mxu1 %vm163_vm2, %v2019_v36 }
0x109f   :  { %4240 = vmatprep.subr.mxu1 %v4526_v6 }
0x10a1   :  { %4238 = vmatmul.mubr.msk.f32.vlgmr.msra.gmra.mxu1 %vm163_vm2, %v4929_v35 }
0x10a2   :  { %4241 = vmatpush3.xpose.msk.msra.mxu1 %vm163_vm2, %v2096_v37  ;;  %4242 = vmatprep.mubr.msk.f32.mxu1 %vm4527_vm1, %v4526_v6 }
0x10a3   :  { %4250 = vmatprep.subr.mxu1 %v4526_v6 }
0x10a5   :  { %4243 = vmatmul.mubr.msk.f32.vlgmr.msra.gmra.mxu1 %vm163_vm2, %v4927_v33 }
0x10a6   :  { %4252 = vmatprep.mubr.msk.f32.mxu1 %vm4527_vm1, %v4526_v6 }
0x1161   :  { %v2090_v38 = vpop.f32.mrf.mxu1 }
0x1162   :  { %v2171_v39 = vmul.f32 0.35355338, %v2090_v38 }
0x1163   :  { %v4239_v40 = vpop.f32.mrf.mxu1 }
0x1164   :  { %v2173_v41 = vsel %vm163_vm2, %v2171_v39, -inf }
0x1165   :  { %2174 = vmax.xlane.f32.xlu1 %v2173_v41  ;;  %v2167_v42 = vpop.f32.mrf.mxu1 }
0x1166   :  { %v2172_v43 = vmul.f32 0.35355338, %v2167_v42 }
0x1167   :  { %v4244_v44 = vpop.f32.mrf.mxu1 }
0x1168   :  { %v2176_v45 = vsel %vm163_vm2, %v2172_v43, -inf }
0x1169   :  { %2177 = vmax.xlane.f32.xlu0 %v2176_v45 }
0x1176   :  { %2195 = vrot.lane.b32.xlu1 %v4929_v35, %s4529_s20 }
0x117a   :  { %2349 = vrot.lane.b32.xlu1 %v4929_v35, %s4530_s23 }
0x117e   :  { %2427 = vrot.lane.b32.xlu1 %v4927_v33, %s4530_s23  ;;  %s5218_s23 = smov 8  }
0x117f   :  { %2271 = vrot.lane.b32.xlu0 %v4927_v33, %s4529_s20  ;;  %s5217_s20 = smov 40  }
0x11ee   :  { %v2175_v47 = vpop.xlane.xlu1 %2174 }
0x11ef   :  { %v2179_v48 = vsub.f32 %v2171_v39, %v2175_v47 }
0x11f1   :  { %v2181_v49 = vmul.f32 1.442695, %v2179_v48 }
0x11f2   :  { %v2196_v50 = vpop.permute.xlu1 %2195  ;;  %v2178_v51 = vpop.xlane.xlu0 %2177 }
0x11f3   :  { %4423 = vpow2.f32 %v2181_v49  ;;  %v2180_v46 = vsub.f32 %v2172_v43, %v2178_v51  ;;  %4246 = vmatpush3.msra.mxu0 %v2196_v50 }
0x11f4   :  { %4255 = vmatprep.subr.mxu0 %v4526_v6 }
0x11f5   :  { %v2183_v52 = vmul.f32 1.442695, %v2180_v46 }
0x11f6   :  { %v2272_v53 = vpop.permute.xlu0 %2271  ;;  %v2350_v58 = vpop.permute.xlu1 %2349 }
0x11f7   :  { %4425 = vpow2.f32 %v2183_v52  ;;  %4251 = vmatpush3.msra.mxu1 %v2272_v53 }
0x11f8   :  { %4260 = vmatprep.subr.mxu1 %v4526_v6 }
0x11fa   :  { %v2428_v59 = vpop.permute.xlu1 %2427 }
0x1200   :  { %v4424_v54 = vpop.eup %4423 }
0x1201   :  { %v2185_v55 = vsel %vm163_vm2, %v4424_v54, 0.0 }
0x1202   :  { %2186 = vadd.xlane.f32.xlu1 %v2185_v55 }
0x1204   :  { %v4426_v56 = vpop.eup %4425 }
0x1205   :  { %v2188_v57 = vsel %vm163_vm2, %v4426_v56, 0.0 }
0x1206   :  { %2189 = vadd.xlane.f32.xlu0 %v2188_v57 }
0x1213   :  { %2425 = vrot.lane.b32.xlu1 %v4927_v33, %s4531_s24 }
0x121c   :  { %2347 = vrot.lane.b32.xlu0 %v4929_v35, %s4531_s24  ;;  %s5219_s24 = smov 16  }
0x128b   :  { %v2187_v60 = vpop.xlane.xlu1 %2186 }
0x128c   :  { %4427 = vrcp.f32 %v2187_v60 }
0x128f   :  { %v2190_v61 = vpop.xlane.xlu0 %2189  ;;  %v2426_v1 = vpop.permute.xlu1 %2425 }
0x1290   :  { %4429 = vrcp.f32 %v2190_v61 }
0x1293   :  { %v2348_v0 = vpop.permute.xlu0 %2347 }
0x1299   :  { %v4428_v5 = vpop.eup %4427 }
0x129a   :  { %v2193_v2 = vmul.f32 %v4428_v5, %v4424_v54 }
0x129c   :  { %4248 = vmatmul.mubr.msk.f32.vlgmr.msra.gmra.mxu0 %vm163_vm2, %v2193_v2 }
0x129d   :  { %v4430_v62 = vpop.eup %4429  ;;  %4256 = vmatpush3.xpose.msk.msra.mxu0 %vm163_vm2, %v2350_v58  ;;  %4257 = vmatprep.mubr.msk.f32.mxu0 %vm4527_vm1, %v4526_v6 }
0x129e   :  { %v2194_v63 = vmul.f32 %v4430_v62, %v4426_v56  ;;  %4265 = vmatprep.subr.mxu0 %v4526_v6 }
0x12a0   :  { %4253 = vmatmul.mubr.msk.f32.vlgmr.msra.gmra.mxu1 %vm163_vm2, %v2194_v63  ;;  %4258 = vmatmul.mubr.msk.f32.vlgmr.msra.gmra.mxu0 %vm163_vm2, %v2348_v0 }
0x12a1   :  { %4261 = vmatpush3.xpose.msk.msra.mxu1 %vm163_vm2, %v2428_v59  ;;  %4262 = vmatprep.mubr.msk.f32.mxu1 %vm4527_vm1, %v4526_v6 }
0x12a2   :  { %4270 = vmatprep.subr.mxu1 %v4526_v6  ;;  %4267 = vmatprep.mubr.msk.f32.mxu0 %vm4527_vm1, %v4526_v6 }
0x12a4   :  { %4263 = vmatmul.mubr.msk.f32.vlgmr.msra.gmra.mxu1 %vm163_vm2, %v2426_v1 }
0x12a5   :  { %4272 = vmatprep.mubr.msk.f32.mxu1 %vm4527_vm1, %v4526_v6 }
0x135c   :  { %v4981_v3 = vpop.f32.mrf.mxu0 }
0x135e   :  { %v4249_v4 = vpop.f32.mrf.mxu0 }
0x1360   :  { %v4983_v7 = vpop.f32.mrf.mxu1  ;;  %v2421_v8 = vpop.f32.mrf.mxu0 }
0x1361   :  { %v2503_v9 = vmul.f32 0.35355338, %v2421_v8 }
0x1362   :  { %v4254_v12 = vpop.f32.mrf.mxu1  ;;  %v4259_v13 = vpop.f32.mrf.mxu0 }
0x1363   :  { %v2505_v14 = vsel %vm163_vm2, %v2503_v9, -inf }
0x1364   :  { %2506 = vmax.xlane.f32.xlu0 %v2505_v14  ;;  %v2499_v10 = vpop.f32.mrf.mxu1 }
0x1365   :  { %v2504_v15 = vmul.f32 0.35355338, %v2499_v10 }
0x1366   :  { %v4264_v16 = vpop.f32.mrf.mxu1 }
0x1367   :  { %v2508_v17 = vsel %vm163_vm2, %v2504_v15, -inf }
0x1368   :  { %2509 = vmax.xlane.f32.xlu1 %v2508_v17 }
0x1379   :  { %2527 = vrot.lane.b32.xlu1 %v4929_v35, %s4532_s25 }
0x137a   :  { %2603 = vrot.lane.b32.xlu0 %v4927_v33, %s4532_s25 }
0x137d   :  { %2681 = vrot.lane.b32.xlu1 %v4929_v35, %s4533_s26 }
0x1381   :  { %2759 = vrot.lane.b32.xlu1 %v4927_v33, %s4533_s26 }
0x1385   :  { %2757 = vrot.lane.b32.xlu1 %v4927_v33, %s4534_s27 }
0x13ed   :  { %v2507_v18 = vpop.xlane.xlu0 %2506 }
0x13ee   :  { %v2511_v19 = vsub.f32 %v2503_v9, %v2507_v18 }
0x13f0   :  { %v2513_v20 = vmul.f32 1.442695, %v2511_v19 }
0x13f1   :  { %v2604_v21 = vpop.permute.xlu0 %2603  ;;  %v2510_v22 = vpop.xlane.xlu1 %2509 }
0x13f2   :  { %4431 = vpow2.f32 %v2513_v20  ;;  %v2512_v23 = vsub.f32 %v2504_v15, %v2510_v22  ;;  %4271 = vmatpush3.msra.mxu1 %v2604_v21 }
0x13f3   :  { %4280 = vmatprep.subr.mxu1 %v4526_v6 }
0x13f4   :  { %v2515_v24 = vmul.f32 1.442695, %v2512_v23 }
0x13f5   :  { %v2528_v11 = vpop.permute.xlu1 %2527 }
0x13f6   :  { %4433 = vpow2.f32 %v2515_v24  ;;  %4266 = vmatpush3.msra.mxu0 %v2528_v11 }
0x13f7   :  { %4275 = vmatprep.subr.mxu0 %v4526_v6 }
0x13f9   :  { %v2682_v34 = vpop.permute.xlu1 %2681 }
0x13fd   :  { %v2760_v39 = vpop.permute.xlu1 %2759 }
0x13ff   :  { %v4432_v25 = vpop.eup %4431 }
0x1400   :  { %v2517_v26 = vsel %vm163_vm2, %v4432_v25, 0.0 }
0x1401   :  { %2518 = vadd.xlane.f32.xlu0 %v2517_v26  ;;  %v2758_v42 = vpop.permute.xlu1 %2757 }
0x1403   :  { %v4434_v27 = vpop.eup %4433 }
0x1404   :  { %v2520_v28 = vsel %vm163_vm2, %v4434_v27, 0.0 }
0x1405   :  { %2521 = vadd.xlane.f32.xlu0 %v2520_v28 }
0x141b   :  { %2679 = vrot.lane.b32.xlu0 %v4929_v35, %s4534_s27 }
0x148a   :  { %v2519_v31 = vpop.xlane.xlu0 %2518 }
0x148b   :  { %4435 = vrcp.f32 %v2519_v31 }
0x148e   :  { %v2522_v32 = vpop.xlane.xlu0 %2521 }
0x148f   :  { %4437 = vrcp.f32 %v2522_v32 }
0x1492   :  { %v2680_v41 = vpop.permute.xlu0 %2679 }
0x1498   :  { %v4436_v36 = vpop.eup %4435 }
0x1499   :  { %v2525_v37 = vmul.f32 %v4436_v36, %v4432_v25 }
0x149b   :  { %4268 = vmatmul.mubr.msk.f32.vlgmr.msra.gmra.mxu0 %vm163_vm2, %v2525_v37 }
0x149c   :  { %v4438_v38 = vpop.eup %4437  ;;  %4276 = vmatpush3.xpose.msk.msra.mxu0 %vm163_vm2, %v2682_v34  ;;  %4277 = vmatprep.mubr.msk.f32.mxu0 %vm4527_vm1, %v4526_v6 }
0x149d   :  { %v2526_v40 = vmul.f32 %v4438_v38, %v4434_v27  ;;  %4285 = vmatprep.subr.mxu0 %v4526_v6 }
0x149f   :  { %4273 = vmatmul.mubr.msk.f32.vlgmr.msra.gmra.mxu1 %vm163_vm2, %v2526_v40  ;;  %4278 = vmatmul.mubr.msk.f32.vlgmr.msra.gmra.mxu0 %vm163_vm2, %v2680_v41 }
0x14a0   :  { %4281 = vmatpush3.xpose.msk.msra.mxu1 %vm163_vm2, %v2760_v39  ;;  %4282 = vmatprep.mubr.msk.f32.mxu1 %vm4527_vm1, %v4526_v6 }
0x14a1   :  { %4290 = vmatprep.subr.mxu1 %v4526_v6  ;;  %4287 = vmatprep.mubr.msk.f32.mxu0 %vm4527_vm1, %v4526_v6 }
0x14a3   :  { %4283 = vmatmul.mubr.msk.f32.vlgmr.msra.gmra.mxu1 %vm163_vm2, %v2758_v42 }
0x14a4   :  { %4292 = vmatprep.mubr.msk.f32.mxu1 %vm4527_vm1, %v4526_v6 }
0x155b   :  { %v5019_v43 = vpop.f32.mrf.mxu0 }
0x155d   :  { %v4269_v44 = vpop.f32.mrf.mxu0 }
0x155f   :  { %v5021_v45 = vpop.f32.mrf.mxu1  ;;  %v2753_v47 = vpop.f32.mrf.mxu0 }
0x1560   :  { %v2835_v48 = vmul.f32 0.35355338, %v2753_v47 }
0x1561   :  { %v4274_v49 = vpop.f32.mrf.mxu1  ;;  %v4279_v50 = vpop.f32.mrf.mxu0 }
0x1562   :  { %v2837_v51 = vsel %vm163_vm2, %v2835_v48, -inf  ;;  %v3936_v49 = vld [vmem:[%s5189_s3 + $0x30] sm:$0xff]  ;;  %v3935_v50 = vld [vmem:[%s5189_s3 + $0x28] sm:$0xff] }
0x1563   :  { %2838 = vmax.xlane.f32.xlu0 %v2837_v51  ;;  %v2831_v46 = vpop.f32.mrf.mxu1  ;;  %v3934_v51 = vld [vmem:[%s5189_s3 + $0x20] sm:$0xff] }
0x1564   :  { %v2836_v52 = vmul.f32 0.35355338, %v2831_v46 }
0x1565   :  { %v4284_v53 = vpop.f32.mrf.mxu1 }
0x1566   :  { %v2840_v54 = vsel %vm163_vm2, %v2836_v52, -inf }
0x1567   :  { %2841 = vmax.xlane.f32.xlu1 %v2840_v54 }
0x1578   :  { %2859 = vrot.lane.b32.xlu1 %v4929_v35, %s4535_s28 }
0x1579   :  { %2935 = vrot.lane.b32.xlu0 %v4927_v33, %s4535_s28 }
0x157c   :  { %3013 = vrot.lane.b32.xlu1 %v4929_v35, %s5215_s2 }
0x1580   :  { %3091 = vrot.lane.b32.xlu1 %v4927_v33, %s5215_s2 }
0x1584   :  { %3089 = vrot.lane.b32.xlu1 %v4927_v33, %s5216_s19 }
0x15ec   :  { %v2839_v55 = vpop.xlane.xlu0 %2838 }
0x15ed   :  { %v2843_v56 = vsub.f32 %v2835_v48, %v2839_v55 }
0x15ef   :  { %v2845_v57 = vmul.f32 1.442695, %v2843_v56 }
0x15f0   :  { %v2936_v58 = vpop.permute.xlu0 %2935  ;;  %v2842_v59 = vpop.xlane.xlu1 %2841 }
0x15f1   :  { %4439 = vpow2.f32 %v2845_v57  ;;  %v2844_v60 = vsub.f32 %v2836_v52, %v2842_v59  ;;  %4291 = vmatpush3.msra.mxu1 %v2936_v58 }
0x15f2   :  { %4300 = vmatprep.subr.mxu1 %v4526_v6 }
0x15f3   :  { %v2847_v61 = vmul.f32 1.442695, %v2844_v60 }
0x15f4   :  { %v2860_v5 = vpop.permute.xlu1 %2859 }
0x15f5   :  { %4441 = vpow2.f32 %v2847_v61  ;;  %4286 = vmatpush3.msra.mxu0 %v2860_v5 }
0x15f6   :  { %4295 = vmatprep.subr.mxu0 %v4526_v6 }
0x15f8   :  { %v3014_v8 = vpop.permute.xlu1 %3013 }
0x15fc   :  { %v3092_v14 = vpop.permute.xlu1 %3091 }
0x15fe   :  { %v4440_v2 = vpop.eup %4439 }
0x15ff   :  { %v2849_v62 = vsel %vm163_vm2, %v4440_v2, 0.0 }
0x1600   :  { %2850 = vadd.xlane.f32.xlu0 %v2849_v62  ;;  %v3090_v16 = vpop.permute.xlu1 %3089 }
0x1602   :  { %v4442_v63 = vpop.eup %4441 }
0x1603   :  { %v2852_v0 = vsel %vm163_vm2, %v4442_v63, 0.0 }
0x1604   :  { %2853 = vadd.xlane.f32.xlu0 %v2852_v0 }
0x161a   :  { %3011 = vrot.lane.b32.xlu0 %v4929_v35, %s5216_s19 }
0x1689   :  { %v2851_v1 = vpop.xlane.xlu0 %2850 }
0x168a   :  { %4443 = vrcp.f32 %v2851_v1 }
0x168d   :  { %v2854_v4 = vpop.xlane.xlu0 %2853 }
0x168e   :  { %4445 = vrcp.f32 %v2854_v4 }
0x1691   :  { %v3012_v15 = vpop.permute.xlu0 %3011 }
0x1697   :  { %v4444_v9 = vpop.eup %4443 }
0x1698   :  { %v2857_v12 = vmul.f32 %v4444_v9, %v4440_v2 }
0x169a   :  { %4288 = vmatmul.mubr.msk.f32.vlgmr.msra.gmra.mxu0 %vm163_vm2, %v2857_v12 }
0x169b   :  { %v4446_v13 = vpop.eup %4445  ;;  %4296 = vmatpush3.xpose.msk.msra.mxu0 %vm163_vm2, %v3014_v8  ;;  %4297 = vmatprep.mubr.msk.f32.mxu0 %vm4527_vm1, %v4526_v6 }
0x169c   :  { %v2858_v10 = vmul.f32 %v4446_v13, %v4442_v63  ;;  %4305 = vmatprep.subr.mxu0 %v4526_v6 }
0x169e   :  { %4293 = vmatmul.mubr.msk.f32.vlgmr.msra.gmra.mxu1 %vm163_vm2, %v2858_v10  ;;  %4298 = vmatmul.mubr.msk.f32.vlgmr.msra.gmra.mxu0 %vm163_vm2, %v3012_v15 }
0x169f   :  { %4301 = vmatpush3.xpose.msk.msra.mxu1 %vm163_vm2, %v3092_v14  ;;  %4302 = vmatprep.mubr.msk.f32.mxu1 %vm4527_vm1, %v4526_v6 }
0x16a0   :  { %4310 = vmatprep.subr.mxu1 %v4526_v6  ;;  %4307 = vmatprep.mubr.msk.f32.mxu0 %vm4527_vm1, %v4526_v6 }
0x16a2   :  { %4303 = vmatmul.mubr.msk.f32.vlgmr.msra.gmra.mxu1 %vm163_vm2, %v3090_v16 }
0x16a3   :  { %4312 = vmatprep.mubr.msk.f32.mxu1 %vm4527_vm1, %v4526_v6 }
0x175a   :  { %v2931_v17 = vpop.f32.mrf.mxu0 }
0x175c   :  { %v4289_v18 = vpop.f32.mrf.mxu0 }
0x175e   :  { %v3007_v19 = vpop.f32.mrf.mxu1  ;;  %v3085_v20 = vpop.f32.mrf.mxu0 }
0x175f   :  { %v3167_v21 = vmul.f32 0.35355338, %v3085_v20 }
0x1760   :  { %v4294_v22 = vpop.f32.mrf.mxu1  ;;  %v4299_v23 = vpop.f32.mrf.mxu0 }
0x1761   :  { %v3169_v24 = vsel %vm163_vm2, %v3167_v21, -inf  ;;  %v3948_v23 = vld [vmem:[%s5193_s7 + $0x30] sm:$0xff] }
0x1762   :  { %3170 = vmax.xlane.f32.xlu0 %v3169_v24  ;;  %v3163_v11 = vpop.f32.mrf.mxu1  ;;  %v3947_v24 = vld [vmem:[%s5193_s7 + $0x28] sm:$0xff] }
0x1763   :  { %v3168_v25 = vmul.f32 0.35355338, %v3163_v11  ;;  %v3946_v11 = vld [vmem:[%s5193_s7 + $0x20] sm:$0xff] }
0x1764   :  { %v4304_v26 = vpop.f32.mrf.mxu1 }
0x1765   :  { %v3172_v27 = vsel %vm163_vm2, %v3168_v25, -inf  ;;  %v3960_v26 = vld [vmem:[%s5195_s9 + $0x70] sm:$0xff] }
0x1766   :  { %3173 = vmax.xlane.f32.xlu1 %v3172_v27  ;;  %v3959_v27 = vld [vmem:[%s5195_s9 + $0x68] sm:$0xff] }
0x1777   :  { %3191 = vrot.lane.b32.xlu1 %v4929_v35, %s5217_s20 }
0x177b   :  { %3345 = vrot.lane.b32.xlu1 %v5019_v43, %s5218_s23 }
0x177f   :  { %3347 = vrot.lane.b32.xlu1 %v5021_v45, %s5218_s23 }
0x1783   :  { %3355 = vrot.lane.b32.xlu1 %v3007_v19, %s5219_s24 }
0x17eb   :  { %v3171_v6 = vpop.xlane.xlu0 %3170 }
0x17ec   :  { %v3175_v28 = vsub.f32 %v3167_v21, %v3171_v6  ;;  %v3958_v6 = vld [vmem:[%s5195_s9 + $0x60] sm:$0xff] }
0x17ee   :  { %v3177_v31 = vmul.f32 1.442695, %v3175_v28 }
0x17ef   :  { %v3174_v32 = vpop.xlane.xlu1 %3173 }
0x17f0   :  { %4447 = vpow2.f32 %v3177_v31  ;;  %v3176_v34 = vsub.f32 %v3168_v25, %v3174_v32  ;;  %v3961_v25 = vld [vmem:[%s5195_s9 + $0x78] sm:$0xff] }
0x17f2   :  { %v3179_v36 = vmul.f32 1.442695, %v3176_v34 }
0x17f3   :  { %v3192_v37 = vpop.permute.xlu1 %3191 }
0x17f4   :  { %4449 = vpow2.f32 %v3179_v36  ;;  %4306 = vmatpush3.msra.mxu0 %v3192_v37 }
0x17f7   :  { %v3346_v55 = vpop.permute.xlu1 %3345 }
0x17f8   :  { %v3367_v58 = vsel %vm163_vm2, %v4981_v3, %v3346_v55  ;;  %v3939_v3 = vld [vmem:[%s5190_s4 + $0x1] ss:$0 sm:$0xff] }
0x17fb   :  { %v3348_v56 = vpop.permute.xlu1 %3347 }
0x17fc   :  { %v3368_v2 = vsel %vm163_vm2, %v4983_v7, %v3348_v56  ;;  %v3957_v56 = vld [vmem:[%s5195_s9 + $0x58] sm:$0xff] }
0x17fd   :  { %v4448_v38 = vpop.eup %4447 }
0x17fe   :  { %v3181_v35 = vsel %vm163_vm2, %v4448_v38, 0.0 }
0x17ff   :  { %3182 = vadd.xlane.f32.xlu0 %v3181_v35  ;;  %v3356_v59 = vpop.permute.xlu1 %3355 }
0x1800   :  { %v3370_v62 = vsel %vm1513_vm4, %v3368_v2, %v3356_v59  ;;  %v3954_v59 = vld [vmem:[%s5195_s9 + $0x40] sm:$0xff] }
0x1801   :  { %v4450_v39 = vpop.eup %4449 }
0x1802   :  { %v3184_v40 = vsel %vm163_vm2, %v4450_v39, 0.0 }
0x1803   :  { %3185 = vadd.xlane.f32.xlu0 %v3184_v40 }
0x1819   :  { %3267 = vrot.lane.b32.xlu0 %v4927_v33, %s5217_s20  ;;  %v3937_v33 = vld [vmem:[%s5189_s3 + $0x38] sm:$0xff] }
0x181a   :  { %4315 = vmatprep.subr.mxu0 %v3937_v33 }
0x181d   :  { %3353 = vrot.lane.b32.xlu0 %v2931_v17, %s5219_s24 }
0x1888   :  { %v3183_v41 = vpop.xlane.xlu0 %3182 }
0x1889   :  { %4451 = vrcp.f32 %v3183_v41 }
0x188c   :  { %v3186_v42 = vpop.xlane.xlu0 %3185 }
0x188d   :  { %4453 = vrcp.f32 %v3186_v42 }
0x1890   :  { %v3268_v43 = vpop.permute.xlu0 %3267 }
0x1891   :  { %4311 = vmatpush3.msra.mxu1 %v3268_v43 }
0x1894   :  { %v3354_v57 = vpop.permute.xlu0 %3353 }
0x1895   :  { %v3369_v60 = vsel %vm1513_vm4, %v3367_v58, %v3354_v57  ;;  %v3956_v57 = vld [vmem:[%s5195_s9 + $0x50] sm:$0xff]  ;;  %v3955_v58 = vld [vmem:[%s5195_s9 + $0x48] sm:$0xff] }
0x1896   :  { %v4452_v44 = vpop.eup %4451 }
0x1897   :  { %v3189_v45 = vmul.f32 %v4452_v44, %v4448_v38 }
0x1899   :  { %4308 = vmatmul.mubr.msk.f32.vlgmr.msra.gmra.mxu0 %vm163_vm2, %v3189_v45 }
0x189a   :  { %v4454_v47 = vpop.eup %4453  ;;  %4316 = vmatpush3.msra.mxu0 %v3937_v33 }
0x189b   :  { %v3190_v48 = vmul.f32 %v4454_v47, %v4450_v39  ;;  %4317 = vmatprep.subr.mxu0 %v3936_v49 }
0x189c   :  { %4318 = vmatpush3.msra.mxu0 %v3936_v49 }
0x189d   :  { %4313 = vmatmul.mubr.msk.f32.vlgmr.msra.gmra.mxu1 %vm163_vm2, %v3190_v48  ;;  %4319 = vmatprep.subr.mxu0 %v3935_v50  ;;  %v3944_v48 = vld [vmem:[%s5191_s5 + $0x1] ss:$0 sm:$0xff] }
0x189e   :  { %4320 = vmatpush3.msra.mxu0 %v3935_v50  ;;  %v3945_v50 = vld [vmem:[%s5192_s6 + $0x1] ss:$0 sm:$0xff] }
0x189f   :  { %4321 = vmatprep.subr.mxu0 %v3934_v51 }
0x18a0   :  { %4322 = vmatpush3.msra.mxu0 %v3934_v51 }
0x18a1   :  { %4337 = vmatprep.subr.mxu0 %v3961_v25 }
0x1959   :  { %v3263_v46 = vpop.f32.mrf.mxu0 }
0x195a   :  { %3361 = vrot.lane.b32.xlu0 %v3263_v46, %s5220_s29 }
0x195b   :  { %v4309_v52 = vpop.f32.mrf.mxu0 }
0x195d   :  { %v3339_v53 = vpop.f32.mrf.mxu1 }
0x195e   :  { %3363 = vrot.lane.b32.xlu1 %v3339_v53, %s5220_s29 }
0x195f   :  { %v4314_v54 = vpop.f32.mrf.mxu1 }
0x19cc   :  { %v3362_v61 = vpop.permute.xlu0 %3361 }
0x19cd   :  { %v3371_v5 = vsel %vm1516_vm3, %v3369_v60, %v3362_v61  ;;  %v3951_v60 = vld [vmem:[%s5194_s8 + $0x1] ss:$0 sm:$0xff] }
0x19ce   :  { %4323 = vmatprep.mubr.msk.f32.mxu0 %vm78_vm0, %v3371_v5 }
0x19d0   :  { %v3364_v63 = vpop.permute.xlu1 %3363 }
0x19d1   :  { %v3372_v0 = vsel %vm1516_vm3, %v3370_v62, %v3364_v63 }
0x19d2   :  { %4324 = vmatmul.mubr.msk.f32.vlgmr.msra.gmra.mxu0 %vm78_vm0, %v3372_v0 }
0x19d3   :  { %4338 = vmatpush3.msra.mxu0 %v3961_v25 }
0x19d4   :  { %4339 = vmatprep.subr.mxu0 %v3960_v26 }
0x19d5   :  { %4340 = vmatpush3.msra.mxu0 %v3960_v26 }
0x19d6   :  { %4341 = vmatprep.subr.mxu0 %v3959_v27 }
0x19d7   :  { %4342 = vmatpush3.msra.mxu0 %v3959_v27 }
0x19d8   :  { %4343 = vmatprep.subr.mxu0 %v3958_v6 }
0x19d9   :  { %4344 = vmatpush3.msra.mxu0 %v3958_v6 }
0x19da   :  { %4345 = vmatprep.subr.mxu0 %v3957_v56 }
0x19db   :  { %4346 = vmatpush3.msra.mxu0 %v3957_v56 }
0x19dc   :  { %4347 = vmatprep.subr.mxu0 %v3956_v57 }
0x19dd   :  { %4348 = vmatpush3.msra.mxu0 %v3956_v57 }
0x19de   :  { %4349 = vmatprep.subr.mxu0 %v3955_v58 }
0x19df   :  { %4350 = vmatpush3.msra.mxu0 %v3955_v58 }
0x19e0   :  { %4351 = vmatprep.subr.mxu0 %v3954_v59 }
0x19e1   :  { %4352 = vmatpush3.msra.mxu0 %v3954_v59 }
0x1a92   :  { %v4325_v1 = vpop.f32.mrf.mxu0 }
0x1a93   :  { %v3464_v4 = vadd.f32 %v4325_v1, %v3939_v3 }
0x1a94   :  { %v3458_v8 = vpop.f32.mrf.mxu0 }
0x1a95   :  { %v3468_v9 = vadd.f32 %v3464_v4, %v4916_v30  ;;  %v3459_v12 = vadd.f32 %v3939_v3, %v3458_v8  ;;  %v3963_v3 = vld [vmem:[%s5196_s10 + $0x1] ss:$0 sm:$0xff] }
0x1a97   :  { %v3476_v13 = vsel %vm78_vm0, %v3468_v9, 0.0  ;;  %v3467_v7 = vadd.f32 %v3459_v12, %v4914_v29  ;;  %v3949_v29 = vld [vmem:[%s5193_s7 + $0x38] sm:$0xff] }
0x1a98   :  { %3477 = vadd.xlane.f32.xlu1 %v3476_v13  ;;  %4326 = vmatprep.subr.mxu1 %v3949_v29 }
0x1a99   :  { %v3473_v14 = vsel %vm78_vm0, %v3467_v7, 0.0  ;;  %4327 = vmatpush3.msra.mxu1 %v3949_v29 }
0x1a9a   :  { %3474 = vadd.xlane.f32.xlu0 %v3473_v14  ;;  %4328 = vmatprep.subr.mxu1 %v3948_v23 }
0x1a9b   :  { %4329 = vmatpush3.msra.mxu1 %v3948_v23 }
0x1a9c   :  { %4330 = vmatprep.subr.mxu1 %v3947_v24 }
0x1a9d   :  { %4331 = vmatpush3.msra.mxu1 %v3947_v24 }
0x1a9e   :  { %4332 = vmatprep.subr.mxu1 %v3946_v11 }
0x1a9f   :  { %4333 = vmatpush3.msra.mxu1 %v3946_v11 }
0x1b21   :  { %v3478_v10 = vpop.xlane.xlu1 %3477 }
0x1b22   :  { %v3480_v15 = vmul.f32 0.03125, %v3478_v10 }
0x1b23   :  { %v3475_v16 = vpop.xlane.xlu0 %3474 }
0x1b24   :  { %v3479_v17 = vmul.f32 0.03125, %v3475_v16  ;;  %v3482_v18 = vsub.f32 %v3468_v9, %v3480_v15 }
0x1b26   :  { %v3481_v19 = vsub.f32 %v3467_v7, %v3479_v17  ;;  %v3484_v22 = vmul.f32 %v3482_v18, %v3482_v18  ;;  %v3514_v46 = vmul.f32 %v3944_v48, %v3482_v18 }
0x1b28   :  { %v3483_v20 = vmul.f32 %v3481_v19, %v3481_v19  ;;  %v3488_v30 = vsel %vm78_vm0, %v3484_v22, 0.0  ;;  %v3513_v33 = vmul.f32 %v3944_v48, %v3481_v19 }
0x1b2a   :  { %v3485_v21 = vsel %vm78_vm0, %v3483_v20, 0.0 }
0x1b2b   :  { %3486 = vadd.xlane.f32.xlu0 %v3485_v21 }
0x1b2f   :  { %3489 = vadd.xlane.f32.xlu0 %v3488_v30 }
0x1bb4   :  { %v3487_v28 = vpop.xlane.xlu0 %3486 }
0x1bb5   :  { %v3491_v31 = vmul.f32 0.032258064, %v3487_v28 }
0x1bb7   :  { %4455 = vrsqrt.f32 %v3491_v31  ;;  %vm3495_vm14 = vcmp.eq.f32.partialorder %v3491_v31, inf  ;;  %v3498_v38 = vand.u32 2147483648, %v3491_v31  ;;  %vm3497_vm15 = vcmp.eq.f32.partialorder %v3491_v31, 0.0 }
0x1bb8   :  { %v3490_v32 = vpop.xlane.xlu0 %3489 }
0x1bb9   :  { %v3492_v34 = vmul.f32 0.032258064, %v3490_v32 }
0x1bbb   :  { %4457 = vrsqrt.f32 %v3492_v34  ;;  %vm3502_vm1 = vcmp.eq.f32.partialorder %v3492_v34, inf  ;;  %v3505_v43 = vand.u32 2147483648, %v3492_v34  ;;  %vm3504_vm2 = vcmp.eq.f32.partialorder %v3492_v34, 0.0 }
0x1bc4   :  { %v4456_v36 = vpop.eup %4455 }
0x1bc5   :  { %v3494_v37 = vmul.f32 %v4456_v36, %v3491_v31 }
0x1bc7   :  { %v3496_v35 = vsel %vm3495_vm14, %v3491_v31, %v3494_v37 }
0x1bc8   :  { %v4458_v39 = vpop.eup %4457  ;;  %v3499_v40 = vsel %vm3497_vm15, %v3498_v38, %v3496_v35 }
0x1bc9   :  { %v3515_v41 = vadd.f32 1e-06, %v3499_v40  ;;  %v3501_v42 = vmul.f32 %v4458_v39, %v3492_v34  ;;  %v3968_v39 = vld [vmem:[%s5197_s11 + $0x1] ss:$0 sm:$0xff] }
0x1bcb   :  { %4459 = vrcp.f32 %v3515_v41  ;;  %v3503_v44 = vsel %vm3502_vm1, %v3492_v34, %v3501_v42  ;;  %v3969_v42 = vld [vmem:[%s5198_s12 + $0x1] ss:$0 sm:$0xff] }
0x1bcc   :  { %v3506_v45 = vsel %vm3504_vm2, %v3505_v43, %v3503_v44 }
0x1bcd   :  { %v3516_v47 = vadd.f32 1e-06, %v3506_v45 }
0x1bcf   :  { %4461 = vrcp.f32 %v3516_v47 }
0x1bd8   :  { %v4460_v49 = vpop.eup %4459 }
0x1bd9   :  { %v3519_v51 = vmul.f32 %v4460_v49, %v3513_v33 }
0x1bdb   :  { %v3527_v52 = vadd.f32 %v3945_v50, %v3519_v51 }
0x1bdc   :  { %v4462_v53 = vpop.eup %4461 }
0x1bdd   :  { %v3520_v54 = vmul.f32 %v4462_v53, %v3514_v46  ;;  %4334 = vmatprep.mubr.msk.f32.mxu1 %vm78_vm0, %v3527_v52 }
0x1bdf   :  { %v3528_v55 = vadd.f32 %v3945_v50, %v3520_v54 }
0x1be1   :  { %4335 = vmatmul.mubr.msk.f32.vlgmr.msra.gmra.mxu1 %vm78_vm0, %v3528_v55 }
0x1ca1   :  { %v4336_v61 = vpop.f32.mrf.mxu1 }
0x1ca2   :  { %v3620_v5 = vadd.f32 %v4336_v61, %v3951_v60 }
0x1ca3   :  { %v3614_v2 = vpop.f32.mrf.mxu1 }
0x1ca4   :  { %v3615_v62 = vadd.f32 %v3951_v60, %v3614_v2  ;;  %v3624_v0 = vmax.f32 %v3620_v5, 0.0 }
0x1ca6   :  { %v3623_v63 = vmax.f32 %v3615_v62, 0.0 }
0x1ca8   :  { %4353 = vmatprep.mubr.msk.f32.mxu0 %vm1781_vm9, %v3623_v63 }
0x1ca9   :  { %4354 = vmatmul.mubr.msk.f32.vlgmr.msra.gmra.mxu0 %vm1781_vm9, %v3624_v0 }
0x1d69   :  { %v4355_v1 = vpop.f32.mrf.mxu0 }
0x1d6a   :  { %v3720_v4 = vadd.f32 %v4355_v1, %v3963_v3 }
0x1d6b   :  { %v3714_v8 = vpop.f32.mrf.mxu0 }
0x1d6c   :  { %v3715_v9 = vadd.f32 %v3963_v3, %v3714_v8  ;;  %v3724_v12 = vadd.f32 %v3720_v4, %v3528_v55 }
0x1d6e   :  { %v3723_v13 = vadd.f32 %v3715_v9, %v3527_v52  ;;  %v3732_v7 = vsel %vm78_vm0, %v3724_v12, 0.0 }
0x1d6f   :  { %3733 = vadd.xlane.f32.xlu0 %v3732_v7 }
0x1d70   :  { %v3729_v14 = vsel %vm78_vm0, %v3723_v13, 0.0 }
0x1d71   :  { %3730 = vadd.xlane.f32.xlu1 %v3729_v14 }
0x1df8   :  { %v3734_v10 = vpop.xlane.xlu0 %3733 }
0x1df9   :  { %v3736_v15 = vmul.f32 0.03125, %v3734_v10  ;;  %v3970_v10 = vld [vmem:[%s5199_s13] ss:$0 sm:$0xff]  ;;  %s4499_s13 = scalar_lea.vmem %s3851_s22, 256 }
0x1dfa   :  { %v3731_v16 = vpop.xlane.xlu1 %3730  ;;  %p4500_p5 = scmp.ne.s32.totalorder %s3851_s22, %s4499_s13  ;;  %p4505_p7 = scmp.lt.s32.totalorder %s4499_s13, %s4499_s13 }
0x1dfb   :  { %v3738_v17 = vsub.f32 %v3724_v12, %v3736_v15  ;;  %v3735_v18 = vmul.f32 0.03125, %v3731_v16 }
0x1dfc   :  { %p4506_p8 = por %p4505_p7, %p4504_p6 }
0x1dfd   :  { %v3737_v19 = vsub.f32 %v3723_v13, %v3735_v18  ;;  %v3740_v20 = vmul.f32 %v3738_v17, %v3738_v17  ;;  %v3770_v40 = vmul.f32 %v3968_v39, %v3738_v17  ;;  %v3971_v17 = vld [vmem:[%s5200_s14] ss:$0 sm:$0xff] }
0x1dfe   :  { %p4507_p9 = pnand %p4506_p8, %p4500_p5 }
0x1dff   :  { %v3744_v21 = vsel %vm78_vm0, %v3740_v20, 0.0  ;;  %v3739_v22 = vmul.f32 %v3737_v19, %v3737_v19  ;;  %v3769_v44 = vmul.f32 %v3968_v39, %v3737_v19 }
0x1e00   :  { %3745 = vadd.xlane.f32.xlu0 %v3744_v21 }
0x1e01   :  { %v3741_v30 = vsel %vm78_vm0, %v3739_v22, 0.0 }
0x1e02   :  { %3742 = vadd.xlane.f32.xlu1 %v3741_v30 }
0x1e89   :  { %v3746_v29 = vpop.xlane.xlu0 %3745 }
0x1e8a   :  { %v3748_v23 = vmul.f32 0.032258064, %v3746_v29 }
0x1e8b   :  { %v3743_v24 = vpop.xlane.xlu1 %3742 }
0x1e8c   :  { %4463 = vrsqrt.f32 %v3748_v23  ;;  %v3747_v11 = vmul.f32 0.032258064, %v3743_v24  ;;  %vm3758_vm3 = vcmp.eq.f32.partialorder %v3748_v23, inf  ;;  %v3761_v27 = vand.u32 2147483648, %v3748_v23 }
0x1e8d   :  { %vm3760_vm4 = vcmp.eq.f32.partialorder %v3748_v23, 0.0 }
0x1e8e   :  { %4465 = vrsqrt.f32 %v3747_v11  ;;  %vm3751_vm5 = vcmp.eq.f32.partialorder %v3747_v11, inf  ;;  %v3754_v34 = vand.u32 2147483648, %v3747_v11  ;;  %vm3753_vm6 = vcmp.eq.f32.partialorder %v3747_v11, 0.0 }
0x1e99   :  { %v4464_v25 = vpop.eup %4463 }
0x1e9a   :  { %v3757_v26 = vmul.f32 %v4464_v25, %v3748_v23 }
0x1e9b   :  { %v4466_v6 = vpop.eup %4465 }
0x1e9c   :  { %v3759_v28 = vsel %vm3758_vm3, %v3748_v23, %v3757_v26  ;;  %v3750_v31 = vmul.f32 %v4466_v6, %v3747_v11 }
0x1e9d   :  { %v3762_v32 = vsel %vm3760_vm4, %v3761_v27, %v3759_v28 }
0x1e9e   :  { %v3772_v36 = vadd.f32 1e-06, %v3762_v32  ;;  %v3752_v37 = vsel %vm3751_vm5, %v3747_v11, %v3750_v31 }
0x1e9f   :  { %v3755_v38 = vsel %vm3753_vm6, %v3754_v34, %v3752_v37 }
0x1ea0   :  { %4467 = vrcp.f32 %v3772_v36  ;;  %v3771_v35 = vadd.f32 1e-06, %v3755_v38 }
0x1ea2   :  { %4469 = vrcp.f32 %v3771_v35 }
0x1ead   :  { %v4468_v41 = vpop.eup %4467 }
0x1eae   :  { %v3776_v43 = vmul.f32 %v4468_v41, %v3770_v40 }
0x1eaf   :  { %v4470_v45 = vpop.eup %4469 }
0x1eb0   :  { %v3784_v47 = vadd.f32 %v3969_v42, %v3776_v43  ;;  %v3775_v48 = vmul.f32 %v4470_v45, %v3769_v44 }
0x1eb2   :  { %v3790_v33 = vsel %vm78_vm0, %v3784_v47, 0.0  ;;  %v3783_v49 = vadd.f32 %v3969_v42, %v3775_v48 }
0x1eb3   :  { %3791 = vadd.xlane.f32.xlu0 %v3790_v33 }
0x1eb4   :  { %v3787_v50 = vsel %vm78_vm0, %v3783_v49, 0.0 }
0x1eb5   :  { %3788 = vadd.xlane.f32.xlu1 %v3787_v50 }
0x1f3c   :  { %v3792_v51 = vpop.xlane.xlu0 %3791 }
0x1f3d   :  { %v3794_v46 = vmul.f32 0.03125, %v3792_v51 }
0x1f3e   :  { %v3789_v53 = vpop.xlane.xlu1 %3788 }
0x1f3f   :  { %v3796_v52 = vsub.f32 %v3784_v47, %v3794_v46  ;;  %v3793_v54 = vmul.f32 0.03125, %v3789_v53 }
0x1f41   :  { %v3798_v55 = vmul.f32 %v3796_v52, %v3796_v52  ;;  %v3795_v56 = vsub.f32 %v3783_v49, %v3793_v54  ;;  %v3828_v15 = vmul.f32 %v3970_v10, %v3796_v52 }
0x1f43   :  { %v3802_v57 = vsel %vm78_vm0, %v3798_v55, 0.0  ;;  %v3797_v58 = vmul.f32 %v3795_v56, %v3795_v56  ;;  %v3827_v19 = vmul.f32 %v3970_v10, %v3795_v56 }
0x1f44   :  { %3803 = vadd.xlane.f32.xlu0 %v3802_v57 }
0x1f45   :  { %v3799_v59 = vsel %vm78_vm0, %v3797_v58, 0.0 }
0x1f46   :  { %3800 = vadd.xlane.f32.xlu1 %v3799_v59 }
0x1fcd   :  { %v3804_v60 = vpop.xlane.xlu0 %3803 }
0x1fce   :  { %v3806_v61 = vmul.f32 0.032258064, %v3804_v60 }
0x1fcf   :  { %v3801_v5 = vpop.xlane.xlu1 %3800 }
0x1fd0   :  { %4471 = vrsqrt.f32 %v3806_v61  ;;  %v3805_v2 = vmul.f32 0.032258064, %v3801_v5  ;;  %vm3816_vm7 = vcmp.eq.f32.partialorder %v3806_v61, inf  ;;  %v3819_v0 = vand.u32 2147483648, %v3806_v61 }
0x1fd1   :  { %vm3818_vm8 = vcmp.eq.f32.partialorder %v3806_v61, 0.0 }
0x1fd2   :  { %4473 = vrsqrt.f32 %v3805_v2  ;;  %vm3809_vm9 = vcmp.eq.f32.partialorder %v3805_v2, inf  ;;  %v3812_v12 = vand.u32 2147483648, %v3805_v2  ;;  %vm3811_vm10 = vcmp.eq.f32.partialorder %v3805_v2, 0.0 }
0x1fdd   :  { %v4472_v62 = vpop.eup %4471 }
0x1fde   :  { %v3815_v63 = vmul.f32 %v4472_v62, %v3806_v61 }
0x1fdf   :  { %v4474_v3 = vpop.eup %4473 }
0x1fe0   :  { %v3817_v1 = vsel %vm3816_vm7, %v3806_v61, %v3815_v63  ;;  %v3808_v8 = vmul.f32 %v4474_v3, %v3805_v2 }
0x1fe1   :  { %v3820_v4 = vsel %vm3818_vm8, %v3819_v0, %v3817_v1 }
0x1fe2   :  { %v3830_v9 = vadd.f32 1e-06, %v3820_v4  ;;  %v3810_v13 = vsel %vm3809_vm9, %v3805_v2, %v3808_v8 }
0x1fe3   :  { %v3813_v7 = vsel %vm3811_vm10, %v3812_v12, %v3810_v13 }
0x1fe4   :  { %4475 = vrcp.f32 %v3830_v9  ;;  %v3829_v14 = vadd.f32 1e-06, %v3813_v7 }
0x1fe6   :  { %4477 = vrcp.f32 %v3829_v14 }
0x1ff1   :  { %v4476_v16 = vpop.eup %4475 }
0x1ff2   :  { %v3834_v18 = vmul.f32 %v4476_v16, %v3828_v15 }
0x1ff3   :  { %v4478_v20 = vpop.eup %4477 }
0x1ff4   :  { %v3842_v21 = vadd.f32 %v3971_v17, %v3834_v18  ;;  %v3833_v22 = vmul.f32 %v4478_v20, %v3827_v19 }
0x1ff6   :  { %3844 = vst.msk [vmem:[#allocation5 + $0x8] sm:$0xff] %vm78_vm0, %v3842_v21  ;;  %v3841_v30 = vadd.f32 %v3971_v17, %v3833_v22 }
0x1ff8   :  { %3843 = vst.msk [vmem:[#allocation5] sm:$0xff] %vm78_vm0, %v3841_v30 }
0x1ff9   :  { %4510 = shalt.err (!%p4507_p9)
}
0x1ffa   :  { %s5221_s14 = smov 128  }
0x1ffb   :  { %3856 = dma.vmem_to_hbm [thread:$0]  %s3851_s22, 256, %s5201_s15, [#allocation4], %s5221_s14, %s5221_s14, %s5218_s23  }
0x1ffc   :  { %4521 = dma.done.wait [#allocation4], 256  }
0x1ffd   :  { %4522 = vsyncadd [#allocation4], 4294967040 }
0x1ffe   :  { %3860 = vsyncpa [#allocation3], 1 }
0x1fff   :  { %3861 = vsyncpa [#allocation4], 1 }

</bundles_post_ra>
